<compile_context>
chip_gen: v6e
topology: v6e:2x2x1
jax: 0.10.0
libtpu: 0.0.40
codegen_flags: <defaults>
</compile_context>

<pallas_src>
import functools

import jax
import jax.numpy as jnp
from jax.experimental import pallas as pl
from jax.experimental.pallas import tpu as pltpu

IN_DIM = 7
IN_PAD = 8              # pad 7 -> 8 (sublane-friendly, full last-dim block)
HID = 128
OUT_DIM = 12
N_HIDDEN_LAYERS = 10    # ten extra (128,128) Linear+ReLU layers


def _mlp_kernel(x_ref, w1_ref, b1_ref, wh_ref, bh_ref, wo_ref, bo_ref, o_ref):
    cdt = wh_ref.dtype   # MXU operand dtype: bf16 (fast path) or f32 (exact path)
    edt = bh_ref.dtype   # bias-add / ReLU dtype: bf16 on v6e/v7x fast path, else f32

    # Layer 0: (TM, 8) @ (8, 128); K=8 so MXU work is negligible -> keep f32 operands.
    h = jnp.dot(x_ref[...], w1_ref[...], preferred_element_type=jnp.float32)
    h = jnp.maximum(h.astype(edt) + b1_ref[...], 0.0)

    # 10 hidden layers, statically unrolled (constant indices, no loop control /
    # dynamic-slice address math).  When edt == cdt == bf16 the activations feed
    # the next matmul with no extra cast and bias+ReLU run on the bf16 VPU.
    for i in range(N_HIDDEN_LAYERS):
        a = jnp.dot(h.astype(cdt), wh_ref[i], preferred_element_type=jnp.float32)
        h = jnp.maximum(a.astype(edt) + bh_ref[i], 0.0)

    # Output layer; lane-dense at 128 columns (real outputs = first 12, sliced
    # off in the wrapper) so stores are unmasked full-lane vst.
    o = jnp.dot(h.astype(cdt), wo_ref[...], preferred_element_type=jnp.float32)
    o_ref[...] = (o + bo_ref[...]).astype(o_ref.dtype)


def init_params(key):
    """Deterministic parameter init matching nn.Linear shapes (stored as (in, out))."""
    keys = jax.random.split(key, 2 * (N_HIDDEN_LAYERS + 2))
    k = iter(keys)

    def lin(kw, kb, fan_in, fan_out):
        bound = 1.0 / jnp.sqrt(fan_in)
        w = jax.random.uniform(kw, (fan_in, fan_out), jnp.float32, -bound, bound)
        b = jax.random.uniform(kb, (fan_out,), jnp.float32, -bound, bound)
        return w, b

    w1, b1 = lin(next(k), next(k), IN_DIM, HID)
    wh, bh = [], []
    for _ in range(N_HIDDEN_LAYERS):
        w, b = lin(next(k), next(k), HID, HID)
        wh.append(w)
        bh.append(b)
    wo, bo = lin(next(k), next(k), HID, OUT_DIM)
    return {
        "w1": w1, "b1": b1,
        "wh": jnp.stack(wh, 0), "bh": jnp.stack(bh, 0),
        "wo": wo, "bo": bo,
    }


def _cdiv(a, b):
    return -(-a // b)


def _tile_plan(n, tm):
    """Pick (tile_rows, steps) so that:
       * rows are processed in 128-row chunks (vreg/MXU aligned),
       * tiles are as big as allowed by `tm` (amortize ~0.35 us/step overhead),
       * there are >= 2 grid steps whenever there are >= 2 chunks, so the single
         'parallel' batch axis keeps both v7x TensorCores busy (v5e/v6e: one
         extra cheap step, negligible),
       * tiles are balanced, bounding padding waste to < steps*128 rows
         (vs up to tm-128 rows with a naive round_up(n, tm))."""
    m = max(1, _cdiv(n, 128))            # number of 128-row chunks
    max_chunks = max(1, tm // 128)
    steps = _cdiv(m, max_chunks)         # minimum steps given the tile cap
    if m >= 2:
        steps = max(steps, 2)            # megacore: >= 2 steps on v7x
    chunks = _cdiv(m, steps)             # balanced chunks per tile
    return chunks * 128, steps


def _bf16_vpu_native():
    """True on chips with a native bf16 VPU (v6e / v7x); False on v5e / unknown,
    where bf16 elementwise would be emulated and regress."""
    try:
        kind = jax.devices()[0].device_kind.lower()
    except Exception:
        return False
    return any(tag in kind for tag in ("v6", "v7", "7x"))


@functools.partial(jax.jit, static_argnames=("tm", "use_bf16", "bf16_elementwise"))
def _pinn_forward(x, params, *, tm, use_bf16, bf16_elementwise):
    n = x.shape[0]
    tm_eff, steps = _tile_plan(n, tm)
    n_pad = tm_eff * steps

    cdt = jnp.bfloat16 if use_bf16 else jnp.float32          # MXU operand dtype
    edt = jnp.bfloat16 if bf16_elementwise else jnp.float32  # bias / ReLU dtype
    odt = jnp.bfloat16 if use_bf16 else jnp.float32          # kernel output dtype

    # Zero padding is exact: padded input features hit zero weight rows, padded
    # output columns and rows are sliced off at the end.
    x_pad = jnp.pad(x.astype(jnp.float32),
                    ((0, n_pad - n), (0, IN_PAD - IN_DIM)))

    w1 = jnp.pad(params["w1"], ((0, IN_PAD - IN_DIM), (0, 0)))            # (8,128) f32
    b1 = params["b1"].reshape(1, HID).astype(edt)                          # (1,128)
    wh = params["wh"].astype(cdt)                                          # (10,128,128)
    bh = params["bh"].reshape(N_HIDDEN_LAYERS, 1, HID).astype(edt)         # (10,1,128)
    wo = jnp.pad(params["wo"], ((0, 0), (0, HID - OUT_DIM))).astype(cdt)   # (128,128)
    bo = jnp.pad(params["bo"], (0, HID - OUT_DIM)).reshape(1, HID)         # (1,128) f32

    out = pl.pallas_call(
        _mlp_kernel,
        out_shape=jax.ShapeDtypeStruct((n_pad, HID), odt),
        grid_spec=pltpu.PrefetchScalarGridSpec(
            num_scalar_prefetch=0,
            grid=(steps,),
            in_specs=[
                pl.BlockSpec((tm_eff, IN_PAD), lambda i: (i, 0)),                  # x
                pl.BlockSpec((IN_PAD, HID), lambda i: (0, 0)),                     # w1
                pl.BlockSpec((1, HID), lambda i: (0, 0)),                          # b1
                pl.BlockSpec((N_HIDDEN_LAYERS, HID, HID), lambda i: (0, 0, 0)),    # wh
                pl.BlockSpec((N_HIDDEN_LAYERS, 1, HID), lambda i: (0, 0, 0)),      # bh
                pl.BlockSpec((HID, HID), lambda i: (0, 0)),                        # wo
                pl.BlockSpec((1, HID), lambda i: (0, 0)),                          # bo
            ],
            out_specs=pl.BlockSpec((tm_eff, HID), lambda i: (i, 0)),
        ),
        # VMEM use is ~4-5 MiB even at tm=2048 -> no vmem_limit_bytes needed on
        # any generation (v7x 64 MiB included).
        compiler_params=pltpu.CompilerParams(
            dimension_semantics=("parallel",),
        ),
    )(x_pad, w1, b1, wh, bh, wo, bo)

    # Tiny slice + cast back to f32 for a stable external dtype; the big
    # (n_pad, 128) kernel writeback stays bf16 on the fast path.
    return out[:n, :OUT_DIM].astype(jnp.float32)


def pinn_forward(x, params, *, tm=2048, use_bf16=True, bf16_elementwise=None):
    if bf16_elementwise is None:
        bf16_elementwise = bool(use_bf16) and _bf16_vpu_native()
    return _pinn_forward(x, params, tm=int(tm), use_bf16=bool(use_bf16),
                         bf16_elementwise=bool(bf16_elementwise and use_bf16))


def pinn_reference(x, params):
    h = jnp.maximum(x @ params["w1"] + params["b1"], 0.0)
    for i in range(N_HIDDEN_LAYERS):
        h = jnp.maximum(h @ params["wh"][i] + params["bh"][i], 0.0)
    return h @ params["wo"] + params["bo"]


if __name__ == "__main__":
    key = jax.random.PRNGKey(0)
    kx, kp = jax.random.split(key)
    params = init_params(kp)

    # --- small batch (single 128-row tile) ---------------------------------
    batch = 8
    x = jax.random.normal(kx, (batch, IN_DIM), jnp.float32)
    y_ref = pinn_reference(x, params)

    # Exact (f32 matmul) path. Tolerance 1e-3: TPU default f32 dot precision may
    # use multi-pass bf16 arithmetic, so we don't demand bit-level agreement
    # through 12 chained matmuls.
    y_f32 = jax.block_until_ready(pinn_forward(x, params, use_bf16=False))
    assert y_f32.shape == (batch, OUT_DIM), y_f32.shape
    assert jnp.allclose(y_f32, y_ref, atol=1e-3, rtol=1e-3), (
        float(jnp.max(jnp.abs(y_f32 - y_ref)))
    )

    # Fast path (bf16 MXU, bf16 elementwise on v6e/v7x, bf16 output): loose check.
    y_fast = jax.block_until_ready(pinn_forward(x, params))
    assert y_fast.shape == (batch, OUT_DIM), y_fast.shape
    assert jnp.allclose(y_fast, y_ref, atol=5e-2, rtol=5e-2), (
        float(jnp.max(jnp.abs(y_fast - y_ref)))
    )

    # --- mid-size batch: exercises the multi-step grid (>= 2 steps, both v7x
    # TCs) and the low-waste balanced padding (300 rows -> 2 tiles of 256). ----
    x_mid = jax.random.normal(kx, (300, IN_DIM), jnp.float32)
    y_mid_ref = pinn_reference(x_mid, params)

    y_mid_f32 = jax.block_until_ready(pinn_forward(x_mid, params, use_bf16=False))
    assert y_mid_f32.shape == (300, OUT_DIM), y_mid_f32.shape
    assert jnp.allclose(y_mid_f32, y_mid_ref, atol=1e-3, rtol=1e-3), (
        float(jnp.max(jnp.abs(y_mid_f32 - y_mid_ref)))
    )

    y_mid_fast = jax.block_until_ready(pinn_forward(x_mid, params))
    assert y_mid_fast.shape == (300, OUT_DIM), y_mid_fast.shape
    assert jnp.allclose(y_mid_fast, y_mid_ref, atol=5e-2, rtol=5e-2), (
        float(jnp.max(jnp.abs(y_mid_fast - y_mid_ref)))
    )

    print("KERNEL_OK")
</pallas_src>

<mosaic_0001>
module attributes {stable_mosaic.version = 11 : i64} {
  func.func @_mlp_kernel(%arg0: i32, %arg1: memref<128x8xf32, #tpu.memory_space<vmem>>, %arg2: memref<8x128xf32, #tpu.memory_space<vmem>>, %arg3: memref<1x128xf32, #tpu.memory_space<vmem>>, %arg4: memref<10x128x128xf32, #tpu.memory_space<vmem>>, %arg5: memref<10x1x128xf32, #tpu.memory_space<vmem>>, %arg6: memref<128x128xf32, #tpu.memory_space<vmem>>, %arg7: memref<1x128xf32, #tpu.memory_space<vmem>>, %arg8: memref<128x128xf32, #tpu.memory_space<vmem>>) attributes {dimension_semantics = [#tpu.dimension_semantics<parallel>], iteration_bounds = array<i64: 1>, scalar_prefetch = 0 : i64, scratch_operands = 0 : i64, tpu.core_type = #tpu.core_type<tc>, window_params = [{transform_indices = @transform_0, window_bounds = array<i64: 128, 8>}, {pipeline_mode = #tpu.pipeline_mode<synchronous>, transform_indices = @transform_1, window_bounds = array<i64: 8, 128>}, {pipeline_mode = #tpu.pipeline_mode<synchronous>, transform_indices = @transform_2, window_bounds = array<i64: 1, 128>}, {pipeline_mode = #tpu.pipeline_mode<synchronous>, transform_indices = @transform_3, window_bounds = array<i64: 10, 128, 128>}, {pipeline_mode = #tpu.pipeline_mode<synchronous>, transform_indices = @transform_4, window_bounds = array<i64: 10, 1, 128>}, {pipeline_mode = #tpu.pipeline_mode<synchronous>, transform_indices = @transform_5, window_bounds = array<i64: 128, 128>}, {pipeline_mode = #tpu.pipeline_mode<synchronous>, transform_indices = @transform_6, window_bounds = array<i64: 1, 128>}, {transform_indices = @transform_7, window_bounds = array<i64: 128, 128>}]} {
    %c0 = arith.constant 0 : index
    %c0_0 = arith.constant 0 : index
    %0 = vector.load %arg1[%c0, %c0_0] : memref<128x8xf32, #tpu.memory_space<vmem>>, vector<128x8xf32>
    %c0_1 = arith.constant 0 : index
    %c0_2 = arith.constant 0 : index
    %1 = vector.load %arg2[%c0_1, %c0_2] : memref<8x128xf32, #tpu.memory_space<vmem>>, vector<8x128xf32>
    %cst = arith.constant dense<0.000000e+00> : vector<128x128xf32>
    %2 = tpu.matmul %0, %1, %cst {dimension_numbers = #tpu.dot_dimension_numbers<[1], [0], [0], [1], [0, 0, 1, 1], [], []>} : vector<128x8xf32>, vector<8x128xf32>, vector<128x128xf32> -> vector<128x128xf32>
    %c0_3 = arith.constant 0 : index
    %c0_4 = arith.constant 0 : index
    %3 = vector.load %arg3[%c0_3, %c0_4] : memref<1x128xf32, #tpu.memory_space<vmem>>, vector<1x128xf32>
    %4 = vector.broadcast %3 : vector<1x128xf32> to vector<128x128xf32>
    %5 = arith.addf %2, %4 : vector<128x128xf32>
    %cst_5 = arith.constant 0.000000e+00 : f32
    %6 = vector.broadcast %cst_5 : f32 to vector<128x128xf32>
    %7 = arith.maximumf %5, %6 : vector<128x128xf32>
    %c0_6 = arith.constant 0 : index
    %c0_7 = arith.constant 0 : index
    %c0_8 = arith.constant 0 : index
    %8 = vector.load %arg4[%c0_6, %c0_7, %c0_8] : memref<10x128x128xf32, #tpu.memory_space<vmem>>, vector<1x128x128xf32>
    %9 = vector.shape_cast %8 : vector<1x128x128xf32> to vector<128x128xf32>
    %cst_9 = arith.constant dense<0.000000e+00> : vector<128x128xf32>
    %10 = tpu.matmul %7, %9, %cst_9 {dimension_numbers = #tpu.dot_dimension_numbers<[1], [0], [0], [1], [0, 0, 1, 1], [], []>} : vector<128x128xf32>, vector<128x128xf32>, vector<128x128xf32> -> vector<128x128xf32>
    %c0_10 = arith.constant 0 : index
    %c0_11 = arith.constant 0 : index
    %c0_12 = arith.constant 0 : index
    %11 = vector.load %arg5[%c0_10, %c0_11, %c0_12] : memref<10x1x128xf32, #tpu.memory_space<vmem>>, vector<1x1x128xf32>
    %12 = vector.shape_cast %11 : vector<1x1x128xf32> to vector<1x128xf32>
    %13 = vector.broadcast %12 : vector<1x128xf32> to vector<128x128xf32>
    %14 = arith.addf %10, %13 : vector<128x128xf32>
    %cst_13 = arith.constant 0.000000e+00 : f32
    %15 = vector.broadcast %cst_13 : f32 to vector<128x128xf32>
    %16 = arith.maximumf %14, %15 : vector<128x128xf32>
    %c1 = arith.constant 1 : index
    %c0_14 = arith.constant 0 : index
    %c0_15 = arith.constant 0 : index
    %17 = vector.load %arg4[%c1, %c0_14, %c0_15] : memref<10x128x128xf32, #tpu.memory_space<vmem>>, vector<1x128x128xf32>
    %18 = vector.shape_cast %17 : vector<1x128x128xf32> to vector<128x128xf32>
    %cst_16 = arith.constant dense<0.000000e+00> : vector<128x128xf32>
    %19 = tpu.matmul %16, %18, %cst_16 {dimension_numbers = #tpu.dot_dimension_numbers<[1], [0], [0], [1], [0, 0, 1, 1], [], []>} : vector<128x128xf32>, vector<128x128xf32>, vector<128x128xf32> -> vector<128x128xf32>
    %c1_17 = arith.constant 1 : index
    %c0_18 = arith.constant 0 : index
    %c0_19 = arith.constant 0 : index
    %20 = vector.load %arg5[%c1_17, %c0_18, %c0_19] : memref<10x1x128xf32, #tpu.memory_space<vmem>>, vector<1x1x128xf32>
    %21 = vector.shape_cast %20 : vector<1x1x128xf32> to vector<1x128xf32>
    %22 = vector.broadcast %21 : vector<1x128xf32> to vector<128x128xf32>
    %23 = arith.addf %19, %22 : vector<128x128xf32>
    %cst_20 = arith.constant 0.000000e+00 : f32
    %24 = vector.broadcast %cst_20 : f32 to vector<128x128xf32>
    %25 = arith.maximumf %23, %24 : vector<128x128xf32>
    %c2 = arith.constant 2 : index
    %c0_21 = arith.constant 0 : index
    %c0_22 = arith.constant 0 : index
    %26 = vector.load %arg4[%c2, %c0_21, %c0_22] : memref<10x128x128xf32, #tpu.memory_space<vmem>>, vector<1x128x128xf32>
    %27 = vector.shape_cast %26 : vector<1x128x128xf32> to vector<128x128xf32>
    %cst_23 = arith.constant dense<0.000000e+00> : vector<128x128xf32>
    %28 = tpu.matmul %25, %27, %cst_23 {dimension_numbers = #tpu.dot_dimension_numbers<[1], [0], [0], [1], [0, 0, 1, 1], [], []>} : vector<128x128xf32>, vector<128x128xf32>, vector<128x128xf32> -> vector<128x128xf32>
    %c2_24 = arith.constant 2 : index
    %c0_25 = arith.constant 0 : index
    %c0_26 = arith.constant 0 : index
    %29 = vector.load %arg5[%c2_24, %c0_25, %c0_26] : memref<10x1x128xf32, #tpu.memory_space<vmem>>, vector<1x1x128xf32>
    %30 = vector.shape_cast %29 : vector<1x1x128xf32> to vector<1x128xf32>
    %31 = vector.broadcast %30 : vector<1x128xf32> to vector<128x128xf32>
    %32 = arith.addf %28, %31 : vector<128x128xf32>
    %cst_27 = arith.constant 0.000000e+00 : f32
    %33 = vector.broadcast %cst_27 : f32 to vector<128x128xf32>
    %34 = arith.maximumf %32, %33 : vector<128x128xf32>
    %c3 = arith.constant 3 : index
    %c0_28 = arith.constant 0 : index
    %c0_29 = arith.constant 0 : index
    %35 = vector.load %arg4[%c3, %c0_28, %c0_29] : memref<10x128x128xf32, #tpu.memory_space<vmem>>, vector<1x128x128xf32>
    %36 = vector.shape_cast %35 : vector<1x128x128xf32> to vector<128x128xf32>
    %cst_30 = arith.constant dense<0.000000e+00> : vector<128x128xf32>
    %37 = tpu.matmul %34, %36, %cst_30 {dimension_numbers = #tpu.dot_dimension_numbers<[1], [0], [0], [1], [0, 0, 1, 1], [], []>} : vector<128x128xf32>, vector<128x128xf32>, vector<128x128xf32> -> vector<128x128xf32>
    %c3_31 = arith.constant 3 : index
    %c0_32 = arith.constant 0 : index
    %c0_33 = arith.constant 0 : index
    %38 = vector.load %arg5[%c3_31, %c0_32, %c0_33] : memref<10x1x128xf32, #tpu.memory_space<vmem>>, vector<1x1x128xf32>
    %39 = vector.shape_cast %38 : vector<1x1x128xf32> to vector<1x128xf32>
    %40 = vector.broadcast %39 : vector<1x128xf32> to vector<128x128xf32>
    %41 = arith.addf %37, %40 : vector<128x128xf32>
    %cst_34 = arith.constant 0.000000e+00 : f32
    %42 = vector.broadcast %cst_34 : f32 to vector<128x128xf32>
    %43 = arith.maximumf %41, %42 : vector<128x128xf32>
    %c4 = arith.constant 4 : index
    %c0_35 = arith.constant 0 : index
    %c0_36 = arith.constant 0 : index
    %44 = vector.load %arg4[%c4, %c0_35, %c0_36] : memref<10x128x128xf32, #tpu.memory_space<vmem>>, vector<1x128x128xf32>
    %45 = vector.shape_cast %44 : vector<1x128x128xf32> to vector<128x128xf32>
    %cst_37 = arith.constant dense<0.000000e+00> : vector<128x128xf32>
    %46 = tpu.matmul %43, %45, %cst_37 {dimension_numbers = #tpu.dot_dimension_numbers<[1], [0], [0], [1], [0, 0, 1, 1], [], []>} : vector<128x128xf32>, vector<128x128xf32>, vector<128x128xf32> -> vector<128x128xf32>
    %c4_38 = arith.constant 4 : index
    %c0_39 = arith.constant 0 : index
    %c0_40 = arith.constant 0 : index
    %47 = vector.load %arg5[%c4_38, %c0_39, %c0_40] : memref<10x1x128xf32, #tpu.memory_space<vmem>>, vector<1x1x128xf32>
    %48 = vector.shape_cast %47 : vector<1x1x128xf32> to vector<1x128xf32>
    %49 = vector.broadcast %48 : vector<1x128xf32> to vector<128x128xf32>
    %50 = arith.addf %46, %49 : vector<128x128xf32>
    %cst_41 = arith.constant 0.000000e+00 : f32
    %51 = vector.broadcast %cst_41 : f32 to vector<128x128xf32>
    %52 = arith.maximumf %50, %51 : vector<128x128xf32>
    %c5 = arith.constant 5 : index
    %c0_42 = arith.constant 0 : index
    %c0_43 = arith.constant 0 : index
    %53 = vector.load %arg4[%c5, %c0_42, %c0_43] : memref<10x128x128xf32, #tpu.memory_space<vmem>>, vector<1x128x128xf32>
    %54 = vector.shape_cast %53 : vector<1x128x128xf32> to vector<128x128xf32>
    %cst_44 = arith.constant dense<0.000000e+00> : vector<128x128xf32>
    %55 = tpu.matmul %52, %54, %cst_44 {dimension_numbers = #tpu.dot_dimension_numbers<[1], [0], [0], [1], [0, 0, 1, 1], [], []>} : vector<128x128xf32>, vector<128x128xf32>, vector<128x128xf32> -> vector<128x128xf32>
    %c5_45 = arith.constant 5 : index
    %c0_46 = arith.constant 0 : index
    %c0_47 = arith.constant 0 : index
    %56 = vector.load %arg5[%c5_45, %c0_46, %c0_47] : memref<10x1x128xf32, #tpu.memory_space<vmem>>, vector<1x1x128xf32>
    %57 = vector.shape_cast %56 : vector<1x1x128xf32> to vector<1x128xf32>
    %58 = vector.broadcast %57 : vector<1x128xf32> to vector<128x128xf32>
    %59 = arith.addf %55, %58 : vector<128x128xf32>
    %cst_48 = arith.constant 0.000000e+00 : f32
    %60 = vector.broadcast %cst_48 : f32 to vector<128x128xf32>
    %61 = arith.maximumf %59, %60 : vector<128x128xf32>
    %c6 = arith.constant 6 : index
    %c0_49 = arith.constant 0 : index
    %c0_50 = arith.constant 0 : index
    %62 = vector.load %arg4[%c6, %c0_49, %c0_50] : memref<10x128x128xf32, #tpu.memory_space<vmem>>, vector<1x128x128xf32>
    %63 = vector.shape_cast %62 : vector<1x128x128xf32> to vector<128x128xf32>
    %cst_51 = arith.constant dense<0.000000e+00> : vector<128x128xf32>
    %64 = tpu.matmul %61, %63, %cst_51 {dimension_numbers = #tpu.dot_dimension_numbers<[1], [0], [0], [1], [0, 0, 1, 1], [], []>} : vector<128x128xf32>, vector<128x128xf32>, vector<128x128xf32> -> vector<128x128xf32>
    %c6_52 = arith.constant 6 : index
    %c0_53 = arith.constant 0 : index
    %c0_54 = arith.constant 0 : index
    %65 = vector.load %arg5[%c6_52, %c0_53, %c0_54] : memref<10x1x128xf32, #tpu.memory_space<vmem>>, vector<1x1x128xf32>
    %66 = vector.shape_cast %65 : vector<1x1x128xf32> to vector<1x128xf32>
    %67 = vector.broadcast %66 : vector<1x128xf32> to vector<128x128xf32>
    %68 = arith.addf %64, %67 : vector<128x128xf32>
    %cst_55 = arith.constant 0.000000e+00 : f32
    %69 = vector.broadcast %cst_55 : f32 to vector<128x128xf32>
    %70 = arith.maximumf %68, %69 : vector<128x128xf32>
    %c7 = arith.constant 7 : index
    %c0_56 = arith.constant 0 : index
    %c0_57 = arith.constant 0 : index
    %71 = vector.load %arg4[%c7, %c0_56, %c0_57] : memref<10x128x128xf32, #tpu.memory_space<vmem>>, vector<1x128x128xf32>
    %72 = vector.shape_cast %71 : vector<1x128x128xf32> to vector<128x128xf32>
    %cst_58 = arith.constant dense<0.000000e+00> : vector<128x128xf32>
    %73 = tpu.matmul %70, %72, %cst_58 {dimension_numbers = #tpu.dot_dimension_numbers<[1], [0], [0], [1], [0, 0, 1, 1], [], []>} : vector<128x128xf32>, vector<128x128xf32>, vector<128x128xf32> -> vector<128x128xf32>
    %c7_59 = arith.constant 7 : index
    %c0_60 = arith.constant 0 : index
    %c0_61 = arith.constant 0 : index
    %74 = vector.load %arg5[%c7_59, %c0_60, %c0_61] : memref<10x1x128xf32, #tpu.memory_space<vmem>>, vector<1x1x128xf32>
    %75 = vector.shape_cast %74 : vector<1x1x128xf32> to vector<1x128xf32>
    %76 = vector.broadcast %75 : vector<1x128xf32> to vector<128x128xf32>
    %77 = arith.addf %73, %76 : vector<128x128xf32>
    %cst_62 = arith.constant 0.000000e+00 : f32
    %78 = vector.broadcast %cst_62 : f32 to vector<128x128xf32>
    %79 = arith.maximumf %77, %78 : vector<128x128xf32>
    %c8 = arith.constant 8 : index
    %c0_63 = arith.constant 0 : index
    %c0_64 = arith.constant 0 : index
    %80 = vector.load %arg4[%c8, %c0_63, %c0_64] : memref<10x128x128xf32, #tpu.memory_space<vmem>>, vector<1x128x128xf32>
    %81 = vector.shape_cast %80 : vector<1x128x128xf32> to vector<128x128xf32>
    %cst_65 = arith.constant dense<0.000000e+00> : vector<128x128xf32>
    %82 = tpu.matmul %79, %81, %cst_65 {dimension_numbers = #tpu.dot_dimension_numbers<[1], [0], [0], [1], [0, 0, 1, 1], [], []>} : vector<128x128xf32>, vector<128x128xf32>, vector<128x128xf32> -> vector<128x128xf32>
    %c8_66 = arith.constant 8 : index
    %c0_67 = arith.constant 0 : index
    %c0_68 = arith.constant 0 : index
    %83 = vector.load %arg5[%c8_66, %c0_67, %c0_68] : memref<10x1x128xf32, #tpu.memory_space<vmem>>, vector<1x1x128xf32>
    %84 = vector.shape_cast %83 : vector<1x1x128xf32> to vector<1x128xf32>
    %85 = vector.broadcast %84 : vector<1x128xf32> to vector<128x128xf32>
    %86 = arith.addf %82, %85 : vector<128x128xf32>
    %cst_69 = arith.constant 0.000000e+00 : f32
    %87 = vector.broadcast %cst_69 : f32 to vector<128x128xf32>
    %88 = arith.maximumf %86, %87 : vector<128x128xf32>
    %c9 = arith.constant 9 : index
    %c0_70 = arith.constant 0 : index
    %c0_71 = arith.constant 0 : index
    %89 = vector.load %arg4[%c9, %c0_70, %c0_71] : memref<10x128x128xf32, #tpu.memory_space<vmem>>, vector<1x128x128xf32>
    %90 = vector.shape_cast %89 : vector<1x128x128xf32> to vector<128x128xf32>
    %cst_72 = arith.constant dense<0.000000e+00> : vector<128x128xf32>
    %91 = tpu.matmul %88, %90, %cst_72 {dimension_numbers = #tpu.dot_dimension_numbers<[1], [0], [0], [1], [0, 0, 1, 1], [], []>} : vector<128x128xf32>, vector<128x128xf32>, vector<128x128xf32> -> vector<128x128xf32>
    %c9_73 = arith.constant 9 : index
    %c0_74 = arith.constant 0 : index
    %c0_75 = arith.constant 0 : index
    %92 = vector.load %arg5[%c9_73, %c0_74, %c0_75] : memref<10x1x128xf32, #tpu.memory_space<vmem>>, vector<1x1x128xf32>
    %93 = vector.shape_cast %92 : vector<1x1x128xf32> to vector<1x128xf32>
    %94 = vector.broadcast %93 : vector<1x128xf32> to vector<128x128xf32>
    %95 = arith.addf %91, %94 : vector<128x128xf32>
    %cst_76 = arith.constant 0.000000e+00 : f32
    %96 = vector.broadcast %cst_76 : f32 to vector<128x128xf32>
    %97 = arith.maximumf %95, %96 : vector<128x128xf32>
    %c0_77 = arith.constant 0 : index
    %c0_78 = arith.constant 0 : index
    %98 = vector.load %arg6[%c0_77, %c0_78] : memref<128x128xf32, #tpu.memory_space<vmem>>, vector<128x128xf32>
    %cst_79 = arith.constant dense<0.000000e+00> : vector<128x128xf32>
    %99 = tpu.matmul %97, %98, %cst_79 {dimension_numbers = #tpu.dot_dimension_numbers<[1], [0], [0], [1], [0, 0, 1, 1], [], []>} : vector<128x128xf32>, vector<128x128xf32>, vector<128x128xf32> -> vector<128x128xf32>
    %c0_80 = arith.constant 0 : index
    %c0_81 = arith.constant 0 : index
    %100 = vector.load %arg7[%c0_80, %c0_81] : memref<1x128xf32, #tpu.memory_space<vmem>>, vector<1x128xf32>
    %101 = vector.broadcast %100 : vector<1x128xf32> to vector<128x128xf32>
    %102 = arith.addf %99, %101 : vector<128x128xf32>
    %c0_82 = arith.constant 0 : index
    %c0_83 = arith.constant 0 : index
    %103 = vector.load %arg8[%c0_82, %c0_83] : memref<128x128xf32, #tpu.memory_space<vmem>>, vector<128x128xf32>
    tpu.vector_store %arg8[%c0_82, %c0_83], %102 {strides = array<i32>} : memref<128x128xf32, #tpu.memory_space<vmem>>, vector<128x128xf32>,
    return
  }
  func.func @transform_0(%arg0: i32) -> (i32, i32) {
    %c0_i32 = arith.constant 0 : i32
    %c0_i32_0 = arith.constant 0 : i32
    return %arg0, %c0_i32 : i32, i32
  }
  func.func @transform_1(%arg0: i32) -> (i32, i32) {
    %c0_i32 = arith.constant 0 : i32
    %c0_i32_0 = arith.constant 0 : i32
    %c0_i32_1 = arith.constant 0 : i32
    return %c0_i32, %c0_i32_0 : i32, i32
  }
  func.func @transform_2(%arg0: i32) -> (i32, i32) {
    %c0_i32 = arith.constant 0 : i32
    %c0_i32_0 = arith.constant 0 : i32
    %c0_i32_1 = arith.constant 0 : i32
    return %c0_i32, %c0_i32_0 : i32, i32
  }
  func.func @transform_3(%arg0: i32) -> (i32, i32, i32) {
    %c0_i32 = arith.constant 0 : i32
    %c0_i32_0 = arith.constant 0 : i32
    %c0_i32_1 = arith.constant 0 : i32
    %c0_i32_2 = arith.constant 0 : i32
    return %c0_i32, %c0_i32_0, %c0_i32_1 : i32, i32, i32
  }
  func.func @transform_4(%arg0: i32) -> (i32, i32, i32) {
    %c0_i32 = arith.constant 0 : i32
    %c0_i32_0 = arith.constant 0 : i32
    %c0_i32_1 = arith.constant 0 : i32
    %c0_i32_2 = arith.constant 0 : i32
    return %c0_i32, %c0_i32_0, %c0_i32_1 : i32, i32, i32
  }
  func.func @transform_5(%arg0: i32) -> (i32, i32) {
    %c0_i32 = arith.constant 0 : i32
    %c0_i32_0 = arith.constant 0 : i32
    %c0_i32_1 = arith.constant 0 : i32
    return %c0_i32, %c0_i32_0 : i32, i32
  }
  func.func @transform_6(%arg0: i32) -> (i32, i32) {
    %c0_i32 = arith.constant 0 : i32
    %c0_i32_0 = arith.constant 0 : i32
    %c0_i32_1 = arith.constant 0 : i32
    return %c0_i32, %c0_i32_0 : i32, i32
  }
  func.func @transform_7(%arg0: i32) -> (i32, i32) {
    %c0_i32 = arith.constant 0 : i32
    %c0_i32_0 = arith.constant 0 : i32
    return %arg0, %c0_i32 : i32, i32
  }
}

</mosaic_0001>

<bundles_post_ra>
// kernel: _pinn_forward.1
= control target key start
LH: loop header
LB: loop body
LE: loop exit
PB: predicated region body
PF: predicated region fallthrough
CT: control target
= control target key end

     0   :  { %12 = vsyncpa [#allocation3], 0  ;;  %s3426_s24 = smov [#allocation2]   ;;  %s3737_s0 = inlined_call_operand.vmem [shape: f32[128,8], index: 0, kind: input, shape index: {}]   ;;  %s3738_s1 = inlined_call_operand.vmem [shape: f32[8,128], index: 1, kind: input, shape index: {}]   ;;  %s3739_s2 = inlined_call_operand.vmem [shape: f32[1,128], index: 2, kind: input, shape index: {}]   ;;  %s3740_s3 = inlined_call_operand.hbm [shape: f32[10,128,128], index: 3, kind: input, shape index: {}]   ;;  %s3741_s4 = inlined_call_operand.vmem [shape: f32[10,1,128], index: 4, kind: input, shape index: {}]   ;;  %s3742_s5 = inlined_call_operand.vmem [shape: f32[128,128], index: 5, kind: input, shape index: {}]   ;;  %s3743_s6 = inlined_call_operand.vmem [shape: f32[1,128], index: 6, kind: input, shape index: {}]   ;;  %s3744_s7 = inlined_call_operand.vmem [shape: f32[128,128], index: 7, kind: output, shape index: {}]  }
   0x1   :  { %s24_s25 = sshll.u32 %s3426_s24, 4  ;;  %s25_s25 = int_to_ptr.vmem [resolvable:$true] %s24_s25 }
   0x2   :  { %s3412_s26 = scalar_lea.vmem %s25_s25, 20480  ;;  %p3417_p1 = scmp.lt.s32.totalorder %s25_s25, %s25_s25 }
   0x3   :  { %p3413_p0 = scmp.ne.s32.totalorder %s25_s25, %s3412_s26  ;;  %p3418_p2 = scmp.lt.s32.totalorder %s3412_s26, %s3412_s26 }
   0x5   :  { %p3419_p3 = por %p3418_p2, %p3417_p1 }
   0x7   :  { %p3420_p4 = pnand %p3419_p3, %p3413_p0 }
   0x9   :  { %3423 = shalt.err (!%p3420_p4)
}
   0xa   :  { %s3427_s27 = smov 128   ;;  %s3428_s28 = smov 8  }
   0xb   :  { %30 = dma.hbm_to_vmem [thread:$0]  %s3740_s3, 20480, %s25_s25, [#allocation3], %s3427_s27, %s3427_s27, %s3428_s28  }
   0xc   :  { %3424 = dma.done.wait [#allocation3], 20480  }
   0xd   :  { %3425 = vsyncadd [#allocation3], 4294946816  ;;  %vm64_vm0 = vcmask 64512   ;;  %v56_v0 = vld [vmem:[%s3738_s1] sm:$0xff]  ;;  %v41_v2 = vld [vmem:[%s3737_s0 + $0x8] sm:$0xff] }
   0xe   :  { %v40_v1 = vld [vmem:[%s3737_s0] sm:$0xff]  ;;  %2727 = vmatprep.subr.mxu0 %v56_v0  ;;  %v42_v3 = vld [vmem:[%s3737_s0 + $0x10] sm:$0xff]  ;;  %v43_v4 = vld [vmem:[%s3737_s0 + $0x18] sm:$0xff] }
   0xf   :  { %2729 = vmatprep.mubr.msk.f32.mxu0 %vm64_vm0, %v40_v1  ;;  %2728 = vmatpush3.msra.mxu0 %v56_v0  ;;  %v44_v5 = vld [vmem:[%s3737_s0 + $0x20] sm:$0xff]  ;;  %v289_v6 = vld [vmem:[#allocation2 + $0x78] sm:$0xff]  ;;  %v288_v7 = vld [vmem:[#allocation2 + $0x70] sm:$0xff] }
  0x10   :  { %2730 = vmatmul.mubr.msk.f32.vlgmr.msra.gmra.mxu0 %vm64_vm0, %v41_v2  ;;  %2753 = vmatprep.subr.mxu1 %v289_v6  ;;  %v287_v8 = vld [vmem:[#allocation2 + $0x68] sm:$0xff]  ;;  %v46_v10 = vld [vmem:[%s3737_s0 + $0x30] sm:$0xff]  ;;  %v286_v11 = vld [vmem:[#allocation2 + $0x60] sm:$0xff] }
  0x11   :  { %2732 = vmatprep.mubr.msk.f32.mxu0 %vm64_vm0, %v42_v3  ;;  %2754 = vmatpush3.msra.mxu1 %v289_v6  ;;  %v45_v9 = vld [vmem:[%s3737_s0 + $0x28] sm:$0xff]  ;;  %v285_v12 = vld [vmem:[#allocation2 + $0x58] sm:$0xff]  ;;  %v48_v14 = vld [vmem:[%s3737_s0 + $0x40] sm:$0xff] }
  0x12   :  { %2755 = vmatprep.subr.mxu1 %v288_v7  ;;  %v47_v13 = vld [vmem:[%s3737_s0 + $0x38] sm:$0xff]  ;;  %v284_v15 = vld [vmem:[#allocation2 + $0x50] sm:$0xff]  ;;  %v283_v16 = vld [vmem:[#allocation2 + $0x48] sm:$0xff] }
  0x13   :  { %2756 = vmatpush3.msra.mxu1 %v288_v7  ;;  %v49_v17 = vld [vmem:[%s3737_s0 + $0x48] sm:$0xff]  ;;  %v50_v18 = vld [vmem:[%s3737_s0 + $0x50] sm:$0xff]  ;;  %v282_v19 = vld [vmem:[#allocation2 + $0x40] sm:$0xff] }
  0x14   :  { %2733 = vmatmul.mubr.msk.f32.gmra.mxu0 %vm64_vm0, %v43_v4  ;;  %2757 = vmatprep.subr.mxu1 %v287_v8  ;;  %v281_v20 = vld [vmem:[#allocation2 + $0x38] sm:$0xff]  ;;  %v52_v22 = vld [vmem:[%s3737_s0 + $0x60] sm:$0xff]  ;;  %v280_v23 = vld [vmem:[#allocation2 + $0x30] sm:$0xff] }
  0x15   :  { %2735 = vmatprep.mubr.msk.f32.mxu0 %vm64_vm0, %v44_v5  ;;  %2758 = vmatpush3.msra.mxu1 %v287_v8  ;;  %v51_v21 = vld [vmem:[%s3737_s0 + $0x58] sm:$0xff]  ;;  %v279_v24 = vld [vmem:[#allocation2 + $0x28] sm:$0xff]  ;;  %v54_v26 = vld [vmem:[%s3737_s0 + $0x70] sm:$0xff] }
  0x16   :  { %2759 = vmatprep.subr.mxu1 %v286_v11  ;;  %v53_v25 = vld [vmem:[%s3737_s0 + $0x68] sm:$0xff]  ;;  %v278_v27 = vld [vmem:[#allocation2 + $0x20] sm:$0xff]  ;;  %v55_v28 = vld [vmem:[%s3737_s0 + $0x78] sm:$0xff] }
  0x17   :  { %2760 = vmatpush3.msra.mxu1 %v286_v11  ;;  %v277_v29 = vld [vmem:[#allocation2 + $0x18] sm:$0xff]  ;;  %v276_v30 = vld [vmem:[#allocation2 + $0x10] sm:$0xff]  ;;  %v275_v31 = vld [vmem:[#allocation2 + $0x8] sm:$0xff] }
  0x18   :  { %2736 = vmatmul.mubr.msk.f32.gmra.mxu0 %vm64_vm0, %v45_v9  ;;  %2761 = vmatprep.subr.mxu1 %v285_v12  ;;  %v274_v32 = vld [vmem:[#allocation2] sm:$0xff]  ;;  %v474_v33 = vld [vmem:[#allocation2 + $0xf8] sm:$0xff]  ;;  %v473_v34 = vld [vmem:[#allocation2 + $0xf0] sm:$0xff] }
  0x19   :  { %2738 = vmatprep.mubr.msk.f32.mxu0 %vm64_vm0, %v46_v10  ;;  %2762 = vmatpush3.msra.mxu1 %v285_v12  ;;  %v472_v35 = vld [vmem:[#allocation2 + $0xe8] sm:$0xff]  ;;  %v471_v36 = vld [vmem:[#allocation2 + $0xe0] sm:$0xff]  ;;  %v470_v37 = vld [vmem:[#allocation2 + $0xd8] sm:$0xff] }
  0x1a   :  { %2763 = vmatprep.subr.mxu1 %v284_v15  ;;  %2809 = vmatprep.subr.mxu0 %v474_v33  ;;  %v469_v38 = vld [vmem:[#allocation2 + $0xd0] sm:$0xff]  ;;  %v468_v39 = vld [vmem:[#allocation2 + $0xc8] sm:$0xff]  ;;  %v467_v40 = vld [vmem:[#allocation2 + $0xc0] sm:$0xff] }
  0x1b   :  { %2764 = vmatpush3.msra.mxu1 %v284_v15  ;;  %2810 = vmatpush3.msra.mxu0 %v474_v33  ;;  %v466_v41 = vld [vmem:[#allocation2 + $0xb8] sm:$0xff]  ;;  %v465_v42 = vld [vmem:[#allocation2 + $0xb0] sm:$0xff]  ;;  %v464_v43 = vld [vmem:[#allocation2 + $0xa8] sm:$0xff] }
  0x1c   :  { %2739 = vmatmul.mubr.msk.f32.gmra.mxu0 %vm64_vm0, %v47_v13  ;;  %2765 = vmatprep.subr.mxu1 %v283_v16  ;;  %v463_v44 = vld [vmem:[#allocation2 + $0xa0] sm:$0xff]  ;;  %v462_v45 = vld [vmem:[#allocation2 + $0x98] sm:$0xff] }
  0x1d   :  { %2741 = vmatprep.mubr.msk.f32.mxu0 %vm64_vm0, %v48_v14  ;;  %2766 = vmatpush3.msra.mxu1 %v283_v16  ;;  %v2321_v46 = vld [vmem:[%s3739_s2] ss:$0 sm:$0xff] }
  0x1e   :  { %2767 = vmatprep.subr.mxu1 %v282_v19  ;;  %2811 = vmatprep.subr.mxu0 %v473_v34  ;;  %v459_v33 = vld [vmem:[#allocation2 + $0x80] sm:$0xff] }
  0x1f   :  { %2768 = vmatpush3.msra.mxu1 %v282_v19  ;;  %2812 = vmatpush3.msra.mxu0 %v473_v34  ;;  %v660_v34 = vld [vmem:[#allocation2 + $0x178] sm:$0xff] }
  0x20   :  { %2742 = vmatmul.mubr.msk.f32.gmra.mxu0 %vm64_vm0, %v49_v17  ;;  %2769 = vmatprep.subr.mxu1 %v281_v20 }
  0x21   :  { %2744 = vmatprep.mubr.msk.f32.mxu0 %vm64_vm0, %v50_v18  ;;  %2770 = vmatpush3.msra.mxu1 %v281_v20 }
  0x22   :  { %2771 = vmatprep.subr.mxu1 %v280_v23  ;;  %2813 = vmatprep.subr.mxu0 %v472_v35 }
  0x23   :  { %2772 = vmatpush3.msra.mxu1 %v280_v23  ;;  %2814 = vmatpush3.msra.mxu0 %v472_v35  ;;  %v659_v35 = vld [vmem:[#allocation2 + $0x170] sm:$0xff] }
  0x24   :  { %2745 = vmatmul.mubr.msk.f32.gmra.mxu0 %vm64_vm0, %v51_v21  ;;  %2773 = vmatprep.subr.mxu1 %v279_v24 }
  0x25   :  { %2747 = vmatprep.mubr.msk.f32.mxu0 %vm64_vm0, %v52_v22  ;;  %2774 = vmatpush3.msra.mxu1 %v279_v24 }
  0x26   :  { %2775 = vmatprep.subr.mxu1 %v278_v27  ;;  %2815 = vmatprep.subr.mxu0 %v471_v36 }
  0x27   :  { %2776 = vmatpush3.msra.mxu1 %v278_v27  ;;  %2816 = vmatpush3.msra.mxu0 %v471_v36  ;;  %v658_v36 = vld [vmem:[#allocation2 + $0x168] sm:$0xff] }
  0x28   :  { %2748 = vmatmul.mubr.msk.f32.gmra.mxu0 %vm64_vm0, %v53_v25  ;;  %2777 = vmatprep.subr.mxu1 %v277_v29 }
  0x29   :  { %2750 = vmatprep.mubr.msk.f32.mxu0 %vm64_vm0, %v54_v26  ;;  %2778 = vmatpush3.msra.mxu1 %v277_v29 }
  0x2a   :  { %2779 = vmatprep.subr.mxu1 %v276_v30  ;;  %2817 = vmatprep.subr.mxu0 %v470_v37 }
  0x2b   :  { %2780 = vmatpush3.msra.mxu1 %v276_v30  ;;  %2818 = vmatpush3.msra.mxu0 %v470_v37  ;;  %v657_v37 = vld [vmem:[#allocation2 + $0x160] sm:$0xff] }
  0x2c   :  { %2751 = vmatmul.mubr.msk.f32.gmra.mxu0 %vm64_vm0, %v55_v28  ;;  %2781 = vmatprep.subr.mxu1 %v275_v31 }
  0x2d   :  { %2782 = vmatpush3.msra.mxu1 %v275_v31  ;;  %2819 = vmatprep.subr.mxu0 %v469_v38  ;;  %v461_v31 = vld [vmem:[#allocation2 + $0x90] sm:$0xff] }
  0x2e   :  { %2783 = vmatprep.subr.mxu1 %v274_v32  ;;  %2820 = vmatpush3.msra.mxu0 %v469_v38  ;;  %v656_v38 = vld [vmem:[#allocation2 + $0x158] sm:$0xff] }
  0x2f   :  { %2784 = vmatpush3.msra.mxu1 %v274_v32  ;;  %2821 = vmatprep.subr.mxu0 %v468_v39  ;;  %v460_v32 = vld [vmem:[#allocation2 + $0x88] sm:$0xff] }
  0x30   :  { %2822 = vmatpush3.msra.mxu0 %v468_v39  ;;  %2865 = vmatprep.subr.mxu1 %v660_v34  ;;  %v655_v39 = vld [vmem:[#allocation2 + $0x150] sm:$0xff] }
  0x31   :  { %2823 = vmatprep.subr.mxu0 %v467_v40 }
  0x32   :  { %2824 = vmatpush3.msra.mxu0 %v467_v40  ;;  %v654_v40 = vld [vmem:[#allocation2 + $0x148] sm:$0xff] }
  0x33   :  { %2825 = vmatprep.subr.mxu0 %v466_v41 }
  0x34   :  { %2826 = vmatpush3.msra.mxu0 %v466_v41  ;;  %v653_v41 = vld [vmem:[#allocation2 + $0x140] sm:$0xff] }
  0x35   :  { %2827 = vmatprep.subr.mxu0 %v465_v42 }
  0x36   :  { %2828 = vmatpush3.msra.mxu0 %v465_v42  ;;  %v652_v42 = vld [vmem:[#allocation2 + $0x138] sm:$0xff] }
  0x37   :  { %2829 = vmatprep.subr.mxu0 %v464_v43 }
  0x38   :  { %2830 = vmatpush3.msra.mxu0 %v464_v43  ;;  %v651_v43 = vld [vmem:[#allocation2 + $0x130] sm:$0xff] }
  0x39   :  { %2831 = vmatprep.subr.mxu0 %v463_v44 }
  0x3a   :  { %2832 = vmatpush3.msra.mxu0 %v463_v44  ;;  %v650_v44 = vld [vmem:[#allocation2 + $0x128] sm:$0xff] }
  0x3b   :  { %2833 = vmatprep.subr.mxu0 %v462_v45 }
  0x3c   :  { %2834 = vmatpush3.msra.mxu0 %v462_v45  ;;  %v649_v45 = vld [vmem:[#allocation2 + $0x120] sm:$0xff] }
  0x3d   :  { %2835 = vmatprep.subr.mxu0 %v461_v31 }
  0x3e   :  { %2836 = vmatpush3.msra.mxu0 %v461_v31 }
  0x3f   :  { %2837 = vmatprep.subr.mxu0 %v460_v32 }
  0x40   :  { %2838 = vmatpush3.msra.mxu0 %v460_v32  ;;  %v647_v32 = vld [vmem:[#allocation2 + $0x110] sm:$0xff] }
  0x41   :  { %2839 = vmatprep.subr.mxu0 %v459_v33 }
  0x42   :  { %2840 = vmatpush3.msra.mxu0 %v459_v33  ;;  %v646_v33 = vld [vmem:[#allocation2 + $0x108] sm:$0xff] }
  0xd0   :  { %v2731_v47 = vpop.f32.mrf.mxu0 }
  0xd1   :  { %v185_v48 = vadd.f32 %v2731_v47, %v2321_v46  ;;  %v2338_v47 = vld [vmem:[%s3741_s4] ss:$0 sm:$0xff] }
  0xd2   :  { %v179_v49 = vpop.f32.mrf.mxu0 }
  0xd3   :  { %v180_v50 = vadd.f32 %v2321_v46, %v179_v49  ;;  %v259_v53 = vmax.f32 %v185_v48, 0.0 }
  0xd4   :  { %v2734_v51 = vpop.f32.mrf.mxu0 }
  0xd5   :  { %v258_v52 = vmax.f32 %v180_v50, 0.0  ;;  %v195_v54 = vadd.f32 %v2734_v51, %v2321_v46 }
  0xd6   :  { %v189_v55 = vpop.f32.mrf.mxu0 }
  0xd7   :  { %v190_v56 = vadd.f32 %v2321_v46, %v189_v55  ;;  %2785 = vmatprep.mubr.f32.mxu1 %v258_v52  ;;  %v261_v59 = vmax.f32 %v195_v54, 0.0 }
  0xd8   :  { %v2737_v57 = vpop.f32.mrf.mxu0  ;;  %2786 = vmatmul.mubr.f32.vlgmr.msra.gmra.mxu1 %v259_v53 }
  0xd9   :  { %v260_v58 = vmax.f32 %v190_v56, 0.0  ;;  %v205_v60 = vadd.f32 %v2737_v57, %v2321_v46  ;;  %2866 = vmatpush3.msra.mxu1 %v660_v34  ;;  %v645_v34 = vld [vmem:[#allocation2 + $0x100] sm:$0xff] }
  0xda   :  { %v199_v61 = vpop.f32.mrf.mxu0  ;;  %2867 = vmatprep.subr.mxu1 %v659_v35 }
  0xdb   :  { %v200_v62 = vadd.f32 %v2321_v46, %v199_v61  ;;  %2788 = vmatprep.mubr.f32.mxu1 %v260_v58  ;;  %v263_v1 = vmax.f32 %v205_v60, 0.0  ;;  %2868 = vmatpush3.msra.mxu1 %v659_v35  ;;  %v846_v35 = vld [vmem:[#allocation2 + $0x1f8] sm:$0xff] }
  0xdc   :  { %v2740_v63 = vpop.f32.mrf.mxu0  ;;  %2789 = vmatmul.mubr.f32.gmra.mxu1 %v261_v59  ;;  %2869 = vmatprep.subr.mxu1 %v658_v36 }
  0xdd   :  { %v262_v0 = vmax.f32 %v200_v62, 0.0  ;;  %v215_v2 = vadd.f32 %v2740_v63, %v2321_v46  ;;  %2870 = vmatpush3.msra.mxu1 %v658_v36  ;;  %v845_v36 = vld [vmem:[#allocation2 + $0x1f0] sm:$0xff]  ;;  %2921 = vmatprep.subr.mxu0 %v846_v35 }
  0xde   :  { %v209_v3 = vpop.f32.mrf.mxu0  ;;  %2871 = vmatprep.subr.mxu1 %v657_v37 }
  0xdf   :  { %v210_v4 = vadd.f32 %v2321_v46, %v209_v3  ;;  %2791 = vmatprep.mubr.f32.mxu1 %v262_v0  ;;  %v265_v7 = vmax.f32 %v215_v2, 0.0  ;;  %2872 = vmatpush3.msra.mxu1 %v657_v37  ;;  %v844_v37 = vld [vmem:[#allocation2 + $0x1e8] sm:$0xff] }
  0xe0   :  { %v2743_v5 = vpop.f32.mrf.mxu0  ;;  %2792 = vmatmul.mubr.f32.gmra.mxu1 %v263_v1  ;;  %2873 = vmatprep.subr.mxu1 %v656_v38 }
  0xe1   :  { %v264_v6 = vmax.f32 %v210_v4, 0.0  ;;  %v225_v8 = vadd.f32 %v2743_v5, %v2321_v46  ;;  %2874 = vmatpush3.msra.mxu1 %v656_v38  ;;  %v843_v38 = vld [vmem:[#allocation2 + $0x1e0] sm:$0xff] }
  0xe2   :  { %v219_v9 = vpop.f32.mrf.mxu0  ;;  %2875 = vmatprep.subr.mxu1 %v655_v39 }
  0xe3   :  { %v220_v10 = vadd.f32 %v2321_v46, %v219_v9  ;;  %2794 = vmatprep.mubr.f32.mxu1 %v264_v6  ;;  %v267_v13 = vmax.f32 %v225_v8, 0.0  ;;  %2876 = vmatpush3.msra.mxu1 %v655_v39  ;;  %v842_v39 = vld [vmem:[#allocation2 + $0x1d8] sm:$0xff] }
  0xe4   :  { %v2746_v11 = vpop.f32.mrf.mxu0  ;;  %2795 = vmatmul.mubr.f32.gmra.mxu1 %v265_v7  ;;  %2877 = vmatprep.subr.mxu1 %v654_v40 }
  0xe5   :  { %v266_v12 = vmax.f32 %v220_v10, 0.0  ;;  %v235_v14 = vadd.f32 %v2746_v11, %v2321_v46  ;;  %2878 = vmatpush3.msra.mxu1 %v654_v40  ;;  %v841_v40 = vld [vmem:[#allocation2 + $0x1d0] sm:$0xff] }
  0xe6   :  { %v229_v15 = vpop.f32.mrf.mxu0  ;;  %2879 = vmatprep.subr.mxu1 %v653_v41 }
  0xe7   :  { %v230_v16 = vadd.f32 %v2321_v46, %v229_v15  ;;  %2797 = vmatprep.mubr.f32.mxu1 %v266_v12  ;;  %v269_v19 = vmax.f32 %v235_v14, 0.0  ;;  %2880 = vmatpush3.msra.mxu1 %v653_v41  ;;  %v840_v41 = vld [vmem:[#allocation2 + $0x1c8] sm:$0xff] }
  0xe8   :  { %v2749_v17 = vpop.f32.mrf.mxu0  ;;  %2798 = vmatmul.mubr.f32.gmra.mxu1 %v267_v13  ;;  %2881 = vmatprep.subr.mxu1 %v652_v42 }
  0xe9   :  { %v268_v18 = vmax.f32 %v230_v16, 0.0  ;;  %v245_v20 = vadd.f32 %v2749_v17, %v2321_v46  ;;  %2882 = vmatpush3.msra.mxu1 %v652_v42  ;;  %v839_v42 = vld [vmem:[#allocation2 + $0x1c0] sm:$0xff] }
  0xea   :  { %v239_v21 = vpop.f32.mrf.mxu0  ;;  %2883 = vmatprep.subr.mxu1 %v651_v43 }
  0xeb   :  { %v240_v22 = vadd.f32 %v2321_v46, %v239_v21  ;;  %2800 = vmatprep.mubr.f32.mxu1 %v268_v18  ;;  %v271_v25 = vmax.f32 %v245_v20, 0.0  ;;  %2884 = vmatpush3.msra.mxu1 %v651_v43  ;;  %v838_v43 = vld [vmem:[#allocation2 + $0x1b8] sm:$0xff] }
  0xec   :  { %v2752_v23 = vpop.f32.mrf.mxu0  ;;  %2801 = vmatmul.mubr.f32.gmra.mxu1 %v269_v19  ;;  %2885 = vmatprep.subr.mxu1 %v650_v44 }
  0xed   :  { %v270_v24 = vmax.f32 %v240_v22, 0.0  ;;  %v255_v26 = vadd.f32 %v2752_v23, %v2321_v46  ;;  %2886 = vmatpush3.msra.mxu1 %v650_v44  ;;  %v837_v44 = vld [vmem:[#allocation2 + $0x1b0] sm:$0xff] }
  0xee   :  { %v249_v27 = vpop.f32.mrf.mxu0  ;;  %2887 = vmatprep.subr.mxu1 %v649_v45 }
  0xef   :  { %v250_v28 = vadd.f32 %v2321_v46, %v249_v27  ;;  %2803 = vmatprep.mubr.f32.mxu1 %v270_v24  ;;  %v273_v30 = vmax.f32 %v255_v26, 0.0  ;;  %v648_v46 = vld [vmem:[#allocation2 + $0x118] sm:$0xff]  ;;  %2888 = vmatpush3.msra.mxu1 %v649_v45  ;;  %v836_v45 = vld [vmem:[#allocation2 + $0x1a8] sm:$0xff] }
  0xf0   :  { %2804 = vmatmul.mubr.f32.gmra.mxu1 %v271_v25  ;;  %2889 = vmatprep.subr.mxu1 %v648_v46 }
  0xf1   :  { %v272_v29 = vmax.f32 %v250_v28, 0.0  ;;  %2890 = vmatpush3.msra.mxu1 %v648_v46  ;;  %v835_v46 = vld [vmem:[#allocation2 + $0x1a0] sm:$0xff] }
  0xf2   :  { %2891 = vmatprep.subr.mxu1 %v647_v32 }
  0xf3   :  { %2806 = vmatprep.mubr.f32.mxu1 %v272_v29  ;;  %2892 = vmatpush3.msra.mxu1 %v647_v32 }
  0xf4   :  { %2807 = vmatmul.mubr.f32.gmra.mxu1 %v273_v30  ;;  %2893 = vmatprep.subr.mxu1 %v646_v33 }
  0xf5   :  { %2894 = vmatpush3.msra.mxu1 %v646_v33  ;;  %v833_v33 = vld [vmem:[#allocation2 + $0x190] sm:$0xff] }
  0xf6   :  { %2895 = vmatprep.subr.mxu1 %v645_v34 }
  0xf7   :  { %2896 = vmatpush3.msra.mxu1 %v645_v34  ;;  %v832_v34 = vld [vmem:[#allocation2 + $0x188] sm:$0xff] }
 0x198   :  { %v2787_v48 = vpop.f32.mrf.mxu1 }
 0x199   :  { %v369_v49 = vadd.f32 %v2787_v48, %v2338_v47  ;;  %v2340_v48 = vld [vmem:[%s3741_s4 + $0x1] ss:$0 sm:$0xff] }
 0x19a   :  { %v363_v50 = vpop.f32.mrf.mxu1 }
 0x19b   :  { %v364_v51 = vadd.f32 %v2338_v47, %v363_v50  ;;  %v443_v54 = vmax.f32 %v369_v49, 0.0 }
 0x19c   :  { %v2790_v52 = vpop.f32.mrf.mxu1 }
 0x19d   :  { %v442_v53 = vmax.f32 %v364_v51, 0.0  ;;  %v379_v55 = vadd.f32 %v2790_v52, %v2338_v47 }
 0x19e   :  { %v373_v56 = vpop.f32.mrf.mxu1 }
 0x19f   :  { %v374_v57 = vadd.f32 %v2338_v47, %v373_v56  ;;  %2841 = vmatprep.mubr.f32.mxu0 %v442_v53  ;;  %v445_v60 = vmax.f32 %v379_v55, 0.0 }
 0x1a0   :  { %v2793_v58 = vpop.f32.mrf.mxu1  ;;  %2842 = vmatmul.mubr.f32.vlgmr.msra.gmra.mxu0 %v443_v54 }
 0x1a1   :  { %v444_v59 = vmax.f32 %v374_v57, 0.0  ;;  %v389_v61 = vadd.f32 %v2793_v58, %v2338_v47  ;;  %2922 = vmatpush3.msra.mxu0 %v846_v35  ;;  %v831_v35 = vld [vmem:[#allocation2 + $0x180] sm:$0xff] }
 0x1a2   :  { %v383_v62 = vpop.f32.mrf.mxu1  ;;  %2923 = vmatprep.subr.mxu0 %v845_v36 }
 0x1a3   :  { %v384_v63 = vadd.f32 %v2338_v47, %v383_v62  ;;  %2844 = vmatprep.mubr.f32.mxu0 %v444_v59  ;;  %v447_v2 = vmax.f32 %v389_v61, 0.0  ;;  %2924 = vmatpush3.msra.mxu0 %v845_v36  ;;  %v1032_v36 = vld [vmem:[#allocation2 + $0x278] sm:$0xff] }
 0x1a4   :  { %v2796_v0 = vpop.f32.mrf.mxu1  ;;  %2845 = vmatmul.mubr.f32.gmra.mxu0 %v445_v60  ;;  %2925 = vmatprep.subr.mxu0 %v844_v37 }
 0x1a5   :  { %v446_v1 = vmax.f32 %v384_v63, 0.0  ;;  %v399_v3 = vadd.f32 %v2796_v0, %v2338_v47  ;;  %2926 = vmatpush3.msra.mxu0 %v844_v37  ;;  %v1031_v37 = vld [vmem:[#allocation2 + $0x270] sm:$0xff]  ;;  %2977 = vmatprep.subr.mxu1 %v1032_v36 }
 0x1a6   :  { %v393_v4 = vpop.f32.mrf.mxu1  ;;  %2927 = vmatprep.subr.mxu0 %v843_v38 }
 0x1a7   :  { %v394_v5 = vadd.f32 %v2338_v47, %v393_v4  ;;  %2847 = vmatprep.mubr.f32.mxu0 %v446_v1  ;;  %v449_v8 = vmax.f32 %v399_v3, 0.0  ;;  %2928 = vmatpush3.msra.mxu0 %v843_v38  ;;  %v1030_v38 = vld [vmem:[#allocation2 + $0x268] sm:$0xff] }
 0x1a8   :  { %v2799_v6 = vpop.f32.mrf.mxu1  ;;  %2848 = vmatmul.mubr.f32.gmra.mxu0 %v447_v2  ;;  %2929 = vmatprep.subr.mxu0 %v842_v39 }
 0x1a9   :  { %v448_v7 = vmax.f32 %v394_v5, 0.0  ;;  %v409_v9 = vadd.f32 %v2799_v6, %v2338_v47  ;;  %2930 = vmatpush3.msra.mxu0 %v842_v39  ;;  %v1029_v39 = vld [vmem:[#allocation2 + $0x260] sm:$0xff] }
 0x1aa   :  { %v403_v10 = vpop.f32.mrf.mxu1  ;;  %2931 = vmatprep.subr.mxu0 %v841_v40 }
 0x1ab   :  { %v404_v11 = vadd.f32 %v2338_v47, %v403_v10  ;;  %2850 = vmatprep.mubr.f32.mxu0 %v448_v7  ;;  %v451_v14 = vmax.f32 %v409_v9, 0.0  ;;  %2932 = vmatpush3.msra.mxu0 %v841_v40  ;;  %v1028_v40 = vld [vmem:[#allocation2 + $0x258] sm:$0xff] }
 0x1ac   :  { %v2802_v12 = vpop.f32.mrf.mxu1  ;;  %2851 = vmatmul.mubr.f32.gmra.mxu0 %v449_v8  ;;  %2933 = vmatprep.subr.mxu0 %v840_v41 }
 0x1ad   :  { %v450_v13 = vmax.f32 %v404_v11, 0.0  ;;  %v419_v15 = vadd.f32 %v2802_v12, %v2338_v47  ;;  %2934 = vmatpush3.msra.mxu0 %v840_v41  ;;  %v1027_v41 = vld [vmem:[#allocation2 + $0x250] sm:$0xff] }
 0x1ae   :  { %v413_v16 = vpop.f32.mrf.mxu1  ;;  %2935 = vmatprep.subr.mxu0 %v839_v42 }
 0x1af   :  { %v414_v17 = vadd.f32 %v2338_v47, %v413_v16  ;;  %2853 = vmatprep.mubr.f32.mxu0 %v450_v13  ;;  %v453_v20 = vmax.f32 %v419_v15, 0.0  ;;  %2936 = vmatpush3.msra.mxu0 %v839_v42  ;;  %v1026_v42 = vld [vmem:[#allocation2 + $0x248] sm:$0xff] }
 0x1b0   :  { %v2805_v18 = vpop.f32.mrf.mxu1  ;;  %2854 = vmatmul.mubr.f32.gmra.mxu0 %v451_v14  ;;  %2937 = vmatprep.subr.mxu0 %v838_v43 }
 0x1b1   :  { %v452_v19 = vmax.f32 %v414_v17, 0.0  ;;  %v429_v21 = vadd.f32 %v2805_v18, %v2338_v47  ;;  %2938 = vmatpush3.msra.mxu0 %v838_v43  ;;  %v1025_v43 = vld [vmem:[#allocation2 + $0x240] sm:$0xff] }
 0x1b2   :  { %v423_v22 = vpop.f32.mrf.mxu1  ;;  %2939 = vmatprep.subr.mxu0 %v837_v44 }
 0x1b3   :  { %v424_v23 = vadd.f32 %v2338_v47, %v423_v22  ;;  %2856 = vmatprep.mubr.f32.mxu0 %v452_v19  ;;  %v455_v26 = vmax.f32 %v429_v21, 0.0  ;;  %2940 = vmatpush3.msra.mxu0 %v837_v44  ;;  %v1024_v44 = vld [vmem:[#allocation2 + $0x238] sm:$0xff] }
 0x1b4   :  { %v2808_v24 = vpop.f32.mrf.mxu1  ;;  %2857 = vmatmul.mubr.f32.gmra.mxu0 %v453_v20  ;;  %2941 = vmatprep.subr.mxu0 %v836_v45 }
 0x1b5   :  { %v454_v25 = vmax.f32 %v424_v23, 0.0  ;;  %v439_v27 = vadd.f32 %v2808_v24, %v2338_v47  ;;  %2942 = vmatpush3.msra.mxu0 %v836_v45  ;;  %v1023_v45 = vld [vmem:[#allocation2 + $0x230] sm:$0xff] }
 0x1b6   :  { %v433_v28 = vpop.f32.mrf.mxu1  ;;  %2943 = vmatprep.subr.mxu0 %v835_v46 }
 0x1b7   :  { %v434_v29 = vadd.f32 %v2338_v47, %v433_v28  ;;  %2859 = vmatprep.mubr.f32.mxu0 %v454_v25  ;;  %v457_v31 = vmax.f32 %v439_v27, 0.0  ;;  %v834_v47 = vld [vmem:[#allocation2 + $0x198] sm:$0xff]  ;;  %2944 = vmatpush3.msra.mxu0 %v835_v46  ;;  %v1022_v46 = vld [vmem:[#allocation2 + $0x228] sm:$0xff] }
 0x1b8   :  { %2860 = vmatmul.mubr.f32.gmra.mxu0 %v455_v26  ;;  %2945 = vmatprep.subr.mxu0 %v834_v47 }
 0x1b9   :  { %v456_v30 = vmax.f32 %v434_v29, 0.0  ;;  %2946 = vmatpush3.msra.mxu0 %v834_v47  ;;  %v1021_v47 = vld [vmem:[#allocation2 + $0x220] sm:$0xff] }
 0x1ba   :  { %2947 = vmatprep.subr.mxu0 %v833_v33 }
 0x1bb   :  { %2862 = vmatprep.mubr.f32.mxu0 %v456_v30  ;;  %2948 = vmatpush3.msra.mxu0 %v833_v33 }
 0x1bc   :  { %2863 = vmatmul.mubr.f32.gmra.mxu0 %v457_v31  ;;  %2949 = vmatprep.subr.mxu0 %v832_v34 }
 0x1bd   :  { %2950 = vmatpush3.msra.mxu0 %v832_v34  ;;  %v1019_v34 = vld [vmem:[#allocation2 + $0x210] sm:$0xff] }
 0x1be   :  { %2951 = vmatprep.subr.mxu0 %v831_v35 }
 0x1bf   :  { %2952 = vmatpush3.msra.mxu0 %v831_v35  ;;  %v1018_v35 = vld [vmem:[#allocation2 + $0x208] sm:$0xff] }
 0x260   :  { %v2843_v49 = vpop.f32.mrf.mxu0 }
 0x261   :  { %v555_v50 = vadd.f32 %v2843_v49, %v2340_v48  ;;  %v2342_v49 = vld [vmem:[%s3741_s4 + $0x2] ss:$0 sm:$0xff] }
 0x262   :  { %v549_v51 = vpop.f32.mrf.mxu0 }
 0x263   :  { %v550_v52 = vadd.f32 %v2340_v48, %v549_v51  ;;  %v629_v55 = vmax.f32 %v555_v50, 0.0 }
 0x264   :  { %v2846_v53 = vpop.f32.mrf.mxu0 }
 0x265   :  { %v628_v54 = vmax.f32 %v550_v52, 0.0  ;;  %v565_v56 = vadd.f32 %v2846_v53, %v2340_v48 }
 0x266   :  { %v559_v57 = vpop.f32.mrf.mxu0 }
 0x267   :  { %v560_v58 = vadd.f32 %v2340_v48, %v559_v57  ;;  %2897 = vmatprep.mubr.f32.mxu1 %v628_v54  ;;  %v631_v61 = vmax.f32 %v565_v56, 0.0 }
 0x268   :  { %v2849_v59 = vpop.f32.mrf.mxu0  ;;  %2898 = vmatmul.mubr.f32.vlgmr.msra.gmra.mxu1 %v629_v55 }
 0x269   :  { %v630_v60 = vmax.f32 %v560_v58, 0.0  ;;  %v575_v62 = vadd.f32 %v2849_v59, %v2340_v48  ;;  %2978 = vmatpush3.msra.mxu1 %v1032_v36  ;;  %v1017_v36 = vld [vmem:[#allocation2 + $0x200] sm:$0xff] }
 0x26a   :  { %v569_v63 = vpop.f32.mrf.mxu0  ;;  %2979 = vmatprep.subr.mxu1 %v1031_v37 }
 0x26b   :  { %v570_v0 = vadd.f32 %v2340_v48, %v569_v63  ;;  %2900 = vmatprep.mubr.f32.mxu1 %v630_v60  ;;  %v633_v3 = vmax.f32 %v575_v62, 0.0  ;;  %2980 = vmatpush3.msra.mxu1 %v1031_v37  ;;  %v1218_v37 = vld [vmem:[#allocation2 + $0x2f8] sm:$0xff] }
 0x26c   :  { %v2852_v1 = vpop.f32.mrf.mxu0  ;;  %2901 = vmatmul.mubr.f32.gmra.mxu1 %v631_v61  ;;  %2981 = vmatprep.subr.mxu1 %v1030_v38 }
 0x26d   :  { %v632_v2 = vmax.f32 %v570_v0, 0.0  ;;  %v585_v4 = vadd.f32 %v2852_v1, %v2340_v48  ;;  %2982 = vmatpush3.msra.mxu1 %v1030_v38  ;;  %v1217_v38 = vld [vmem:[#allocation2 + $0x2f0] sm:$0xff]  ;;  %3033 = vmatprep.subr.mxu0 %v1218_v37 }
 0x26e   :  { %v579_v5 = vpop.f32.mrf.mxu0  ;;  %2983 = vmatprep.subr.mxu1 %v1029_v39 }
 0x26f   :  { %v580_v6 = vadd.f32 %v2340_v48, %v579_v5  ;;  %2903 = vmatprep.mubr.f32.mxu1 %v632_v2  ;;  %v635_v9 = vmax.f32 %v585_v4, 0.0  ;;  %2984 = vmatpush3.msra.mxu1 %v1029_v39  ;;  %v1216_v39 = vld [vmem:[#allocation2 + $0x2e8] sm:$0xff] }
 0x270   :  { %v2855_v7 = vpop.f32.mrf.mxu0  ;;  %2904 = vmatmul.mubr.f32.gmra.mxu1 %v633_v3  ;;  %2985 = vmatprep.subr.mxu1 %v1028_v40 }
 0x271   :  { %v634_v8 = vmax.f32 %v580_v6, 0.0  ;;  %v595_v10 = vadd.f32 %v2855_v7, %v2340_v48  ;;  %2986 = vmatpush3.msra.mxu1 %v1028_v40  ;;  %v1215_v40 = vld [vmem:[#allocation2 + $0x2e0] sm:$0xff] }
 0x272   :  { %v589_v11 = vpop.f32.mrf.mxu0  ;;  %2987 = vmatprep.subr.mxu1 %v1027_v41 }
 0x273   :  { %v590_v12 = vadd.f32 %v2340_v48, %v589_v11  ;;  %2906 = vmatprep.mubr.f32.mxu1 %v634_v8  ;;  %v637_v15 = vmax.f32 %v595_v10, 0.0  ;;  %2988 = vmatpush3.msra.mxu1 %v1027_v41  ;;  %v1214_v41 = vld [vmem:[#allocation2 + $0x2d8] sm:$0xff] }
 0x274   :  { %v2858_v13 = vpop.f32.mrf.mxu0  ;;  %2907 = vmatmul.mubr.f32.gmra.mxu1 %v635_v9  ;;  %2989 = vmatprep.subr.mxu1 %v1026_v42 }
 0x275   :  { %v636_v14 = vmax.f32 %v590_v12, 0.0  ;;  %v605_v16 = vadd.f32 %v2858_v13, %v2340_v48  ;;  %2990 = vmatpush3.msra.mxu1 %v1026_v42  ;;  %v1213_v42 = vld [vmem:[#allocation2 + $0x2d0] sm:$0xff] }
 0x276   :  { %v599_v17 = vpop.f32.mrf.mxu0  ;;  %2991 = vmatprep.subr.mxu1 %v1025_v43 }
 0x277   :  { %v600_v18 = vadd.f32 %v2340_v48, %v599_v17  ;;  %2909 = vmatprep.mubr.f32.mxu1 %v636_v14  ;;  %v639_v21 = vmax.f32 %v605_v16, 0.0  ;;  %2992 = vmatpush3.msra.mxu1 %v1025_v43  ;;  %v1212_v43 = vld [vmem:[#allocation2 + $0x2c8] sm:$0xff] }
 0x278   :  { %v2861_v19 = vpop.f32.mrf.mxu0  ;;  %2910 = vmatmul.mubr.f32.gmra.mxu1 %v637_v15  ;;  %2993 = vmatprep.subr.mxu1 %v1024_v44 }
 0x279   :  { %v638_v20 = vmax.f32 %v600_v18, 0.0  ;;  %v615_v22 = vadd.f32 %v2861_v19, %v2340_v48  ;;  %2994 = vmatpush3.msra.mxu1 %v1024_v44  ;;  %v1211_v44 = vld [vmem:[#allocation2 + $0x2c0] sm:$0xff] }
 0x27a   :  { %v609_v23 = vpop.f32.mrf.mxu0  ;;  %2995 = vmatprep.subr.mxu1 %v1023_v45 }
 0x27b   :  { %v610_v24 = vadd.f32 %v2340_v48, %v609_v23  ;;  %2912 = vmatprep.mubr.f32.mxu1 %v638_v20  ;;  %v641_v27 = vmax.f32 %v615_v22, 0.0  ;;  %2996 = vmatpush3.msra.mxu1 %v1023_v45  ;;  %v1210_v45 = vld [vmem:[#allocation2 + $0x2b8] sm:$0xff] }
 0x27c   :  { %v2864_v25 = vpop.f32.mrf.mxu0  ;;  %2913 = vmatmul.mubr.f32.gmra.mxu1 %v639_v21  ;;  %2997 = vmatprep.subr.mxu1 %v1022_v46 }
 0x27d   :  { %v640_v26 = vmax.f32 %v610_v24, 0.0  ;;  %v625_v28 = vadd.f32 %v2864_v25, %v2340_v48  ;;  %2998 = vmatpush3.msra.mxu1 %v1022_v46  ;;  %v1209_v46 = vld [vmem:[#allocation2 + $0x2b0] sm:$0xff] }
 0x27e   :  { %v619_v29 = vpop.f32.mrf.mxu0  ;;  %2999 = vmatprep.subr.mxu1 %v1021_v47 }
 0x27f   :  { %v620_v30 = vadd.f32 %v2340_v48, %v619_v29  ;;  %2915 = vmatprep.mubr.f32.mxu1 %v640_v26  ;;  %v643_v32 = vmax.f32 %v625_v28, 0.0  ;;  %v1020_v48 = vld [vmem:[#allocation2 + $0x218] sm:$0xff]  ;;  %3000 = vmatpush3.msra.mxu1 %v1021_v47  ;;  %v1208_v47 = vld [vmem:[#allocation2 + $0x2a8] sm:$0xff] }
 0x280   :  { %2916 = vmatmul.mubr.f32.gmra.mxu1 %v641_v27  ;;  %3001 = vmatprep.subr.mxu1 %v1020_v48 }
 0x281   :  { %v642_v31 = vmax.f32 %v620_v30, 0.0  ;;  %3002 = vmatpush3.msra.mxu1 %v1020_v48  ;;  %v1207_v48 = vld [vmem:[#allocation2 + $0x2a0] sm:$0xff] }
 0x282   :  { %3003 = vmatprep.subr.mxu1 %v1019_v34 }
 0x283   :  { %2918 = vmatprep.mubr.f32.mxu1 %v642_v31  ;;  %3004 = vmatpush3.msra.mxu1 %v1019_v34 }
 0x284   :  { %2919 = vmatmul.mubr.f32.gmra.mxu1 %v643_v32  ;;  %3005 = vmatprep.subr.mxu1 %v1018_v35 }
 0x285   :  { %3006 = vmatpush3.msra.mxu1 %v1018_v35  ;;  %v1205_v35 = vld [vmem:[#allocation2 + $0x290] sm:$0xff] }
 0x286   :  { %3007 = vmatprep.subr.mxu1 %v1017_v36 }
 0x287   :  { %3008 = vmatpush3.msra.mxu1 %v1017_v36  ;;  %v1204_v36 = vld [vmem:[#allocation2 + $0x288] sm:$0xff] }
 0x328   :  { %v2899_v50 = vpop.f32.mrf.mxu1 }
 0x329   :  { %v741_v51 = vadd.f32 %v2899_v50, %v2342_v49  ;;  %v2344_v50 = vld [vmem:[%s3741_s4 + $0x3] ss:$0 sm:$0xff] }
 0x32a   :  { %v735_v52 = vpop.f32.mrf.mxu1 }
 0x32b   :  { %v736_v53 = vadd.f32 %v2342_v49, %v735_v52  ;;  %v815_v56 = vmax.f32 %v741_v51, 0.0 }
 0x32c   :  { %v2902_v54 = vpop.f32.mrf.mxu1 }
 0x32d   :  { %v814_v55 = vmax.f32 %v736_v53, 0.0  ;;  %v751_v57 = vadd.f32 %v2902_v54, %v2342_v49 }
 0x32e   :  { %v745_v58 = vpop.f32.mrf.mxu1 }
 0x32f   :  { %v746_v59 = vadd.f32 %v2342_v49, %v745_v58  ;;  %2953 = vmatprep.mubr.f32.mxu0 %v814_v55  ;;  %v817_v62 = vmax.f32 %v751_v57, 0.0 }
 0x330   :  { %v2905_v60 = vpop.f32.mrf.mxu1  ;;  %2954 = vmatmul.mubr.f32.vlgmr.msra.gmra.mxu0 %v815_v56 }
 0x331   :  { %v816_v61 = vmax.f32 %v746_v59, 0.0  ;;  %v761_v63 = vadd.f32 %v2905_v60, %v2342_v49  ;;  %3034 = vmatpush3.msra.mxu0 %v1218_v37  ;;  %v1203_v37 = vld [vmem:[#allocation2 + $0x280] sm:$0xff] }
 0x332   :  { %v755_v0 = vpop.f32.mrf.mxu1  ;;  %3035 = vmatprep.subr.mxu0 %v1217_v38 }
 0x333   :  { %v756_v1 = vadd.f32 %v2342_v49, %v755_v0  ;;  %2956 = vmatprep.mubr.f32.mxu0 %v816_v61  ;;  %v819_v4 = vmax.f32 %v761_v63, 0.0  ;;  %3036 = vmatpush3.msra.mxu0 %v1217_v38  ;;  %v1404_v38 = vld [vmem:[#allocation2 + $0x378] sm:$0xff] }
 0x334   :  { %v2908_v2 = vpop.f32.mrf.mxu1  ;;  %2957 = vmatmul.mubr.f32.gmra.mxu0 %v817_v62  ;;  %3037 = vmatprep.subr.mxu0 %v1216_v39 }
 0x335   :  { %v818_v3 = vmax.f32 %v756_v1, 0.0  ;;  %v771_v5 = vadd.f32 %v2908_v2, %v2342_v49  ;;  %3038 = vmatpush3.msra.mxu0 %v1216_v39  ;;  %v1403_v39 = vld [vmem:[#allocation2 + $0x370] sm:$0xff]  ;;  %3089 = vmatprep.subr.mxu1 %v1404_v38 }
 0x336   :  { %v765_v6 = vpop.f32.mrf.mxu1  ;;  %3039 = vmatprep.subr.mxu0 %v1215_v40 }
 0x337   :  { %v766_v7 = vadd.f32 %v2342_v49, %v765_v6  ;;  %2959 = vmatprep.mubr.f32.mxu0 %v818_v3  ;;  %v821_v10 = vmax.f32 %v771_v5, 0.0  ;;  %3040 = vmatpush3.msra.mxu0 %v1215_v40  ;;  %v1402_v40 = vld [vmem:[#allocation2 + $0x368] sm:$0xff] }
 0x338   :  { %v2911_v8 = vpop.f32.mrf.mxu1  ;;  %2960 = vmatmul.mubr.f32.gmra.mxu0 %v819_v4  ;;  %3041 = vmatprep.subr.mxu0 %v1214_v41 }
 0x339   :  { %v820_v9 = vmax.f32 %v766_v7, 0.0  ;;  %v781_v11 = vadd.f32 %v2911_v8, %v2342_v49  ;;  %3042 = vmatpush3.msra.mxu0 %v1214_v41  ;;  %v1401_v41 = vld [vmem:[#allocation2 + $0x360] sm:$0xff] }
 0x33a   :  { %v775_v12 = vpop.f32.mrf.mxu1  ;;  %3043 = vmatprep.subr.mxu0 %v1213_v42 }
 0x33b   :  { %v776_v13 = vadd.f32 %v2342_v49, %v775_v12  ;;  %2962 = vmatprep.mubr.f32.mxu0 %v820_v9  ;;  %v823_v16 = vmax.f32 %v781_v11, 0.0  ;;  %3044 = vmatpush3.msra.mxu0 %v1213_v42  ;;  %v1400_v42 = vld [vmem:[#allocation2 + $0x358] sm:$0xff] }
 0x33c   :  { %v2914_v14 = vpop.f32.mrf.mxu1  ;;  %2963 = vmatmul.mubr.f32.gmra.mxu0 %v821_v10  ;;  %3045 = vmatprep.subr.mxu0 %v1212_v43 }
 0x33d   :  { %v822_v15 = vmax.f32 %v776_v13, 0.0  ;;  %v791_v17 = vadd.f32 %v2914_v14, %v2342_v49  ;;  %3046 = vmatpush3.msra.mxu0 %v1212_v43  ;;  %v1399_v43 = vld [vmem:[#allocation2 + $0x350] sm:$0xff] }
 0x33e   :  { %v785_v18 = vpop.f32.mrf.mxu1  ;;  %3047 = vmatprep.subr.mxu0 %v1211_v44 }
 0x33f   :  { %v786_v19 = vadd.f32 %v2342_v49, %v785_v18  ;;  %2965 = vmatprep.mubr.f32.mxu0 %v822_v15  ;;  %v825_v22 = vmax.f32 %v791_v17, 0.0  ;;  %3048 = vmatpush3.msra.mxu0 %v1211_v44  ;;  %v1398_v44 = vld [vmem:[#allocation2 + $0x348] sm:$0xff] }
 0x340   :  { %v2917_v20 = vpop.f32.mrf.mxu1  ;;  %2966 = vmatmul.mubr.f32.gmra.mxu0 %v823_v16  ;;  %3049 = vmatprep.subr.mxu0 %v1210_v45 }
 0x341   :  { %v824_v21 = vmax.f32 %v786_v19, 0.0  ;;  %v801_v23 = vadd.f32 %v2917_v20, %v2342_v49  ;;  %3050 = vmatpush3.msra.mxu0 %v1210_v45  ;;  %v1397_v45 = vld [vmem:[#allocation2 + $0x340] sm:$0xff] }
 0x342   :  { %v795_v24 = vpop.f32.mrf.mxu1  ;;  %3051 = vmatprep.subr.mxu0 %v1209_v46 }
 0x343   :  { %v796_v25 = vadd.f32 %v2342_v49, %v795_v24  ;;  %2968 = vmatprep.mubr.f32.mxu0 %v824_v21  ;;  %v827_v28 = vmax.f32 %v801_v23, 0.0  ;;  %3052 = vmatpush3.msra.mxu0 %v1209_v46  ;;  %v1396_v46 = vld [vmem:[#allocation2 + $0x338] sm:$0xff] }
 0x344   :  { %v2920_v26 = vpop.f32.mrf.mxu1  ;;  %2969 = vmatmul.mubr.f32.gmra.mxu0 %v825_v22  ;;  %3053 = vmatprep.subr.mxu0 %v1208_v47 }
 0x345   :  { %v826_v27 = vmax.f32 %v796_v25, 0.0  ;;  %v811_v29 = vadd.f32 %v2920_v26, %v2342_v49  ;;  %3054 = vmatpush3.msra.mxu0 %v1208_v47  ;;  %v1395_v47 = vld [vmem:[#allocation2 + $0x330] sm:$0xff] }
 0x346   :  { %v805_v30 = vpop.f32.mrf.mxu1  ;;  %3055 = vmatprep.subr.mxu0 %v1207_v48 }
 0x347   :  { %v806_v31 = vadd.f32 %v2342_v49, %v805_v30  ;;  %2971 = vmatprep.mubr.f32.mxu0 %v826_v27  ;;  %v829_v33 = vmax.f32 %v811_v29, 0.0  ;;  %v1206_v49 = vld [vmem:[#allocation2 + $0x298] sm:$0xff]  ;;  %3056 = vmatpush3.msra.mxu0 %v1207_v48  ;;  %v1394_v48 = vld [vmem:[#allocation2 + $0x328] sm:$0xff] }
 0x348   :  { %2972 = vmatmul.mubr.f32.gmra.mxu0 %v827_v28  ;;  %3057 = vmatprep.subr.mxu0 %v1206_v49 }
 0x349   :  { %v828_v32 = vmax.f32 %v806_v31, 0.0  ;;  %3058 = vmatpush3.msra.mxu0 %v1206_v49  ;;  %v1393_v49 = vld [vmem:[#allocation2 + $0x320] sm:$0xff] }
 0x34a   :  { %3059 = vmatprep.subr.mxu0 %v1205_v35 }
 0x34b   :  { %2974 = vmatprep.mubr.f32.mxu0 %v828_v32  ;;  %3060 = vmatpush3.msra.mxu0 %v1205_v35 }
 0x34c   :  { %2975 = vmatmul.mubr.f32.gmra.mxu0 %v829_v33  ;;  %3061 = vmatprep.subr.mxu0 %v1204_v36 }
 0x34d   :  { %3062 = vmatpush3.msra.mxu0 %v1204_v36  ;;  %v1391_v36 = vld [vmem:[#allocation2 + $0x310] sm:$0xff] }
 0x34e   :  { %3063 = vmatprep.subr.mxu0 %v1203_v37 }
 0x34f   :  { %3064 = vmatpush3.msra.mxu0 %v1203_v37  ;;  %v1390_v37 = vld [vmem:[#allocation2 + $0x308] sm:$0xff] }
 0x3f0   :  { %v2955_v51 = vpop.f32.mrf.mxu0 }
 0x3f1   :  { %v927_v52 = vadd.f32 %v2955_v51, %v2344_v50  ;;  %v2346_v51 = vld [vmem:[%s3741_s4 + $0x4] ss:$0 sm:$0xff] }
 0x3f2   :  { %v921_v53 = vpop.f32.mrf.mxu0 }
 0x3f3   :  { %v922_v54 = vadd.f32 %v2344_v50, %v921_v53  ;;  %v1001_v57 = vmax.f32 %v927_v52, 0.0 }
 0x3f4   :  { %v2958_v55 = vpop.f32.mrf.mxu0 }
 0x3f5   :  { %v1000_v56 = vmax.f32 %v922_v54, 0.0  ;;  %v937_v58 = vadd.f32 %v2958_v55, %v2344_v50 }
 0x3f6   :  { %v931_v59 = vpop.f32.mrf.mxu0 }
 0x3f7   :  { %v932_v60 = vadd.f32 %v2344_v50, %v931_v59  ;;  %3009 = vmatprep.mubr.f32.mxu1 %v1000_v56  ;;  %v1003_v63 = vmax.f32 %v937_v58, 0.0 }
 0x3f8   :  { %v2961_v61 = vpop.f32.mrf.mxu0  ;;  %3010 = vmatmul.mubr.f32.vlgmr.msra.gmra.mxu1 %v1001_v57 }
 0x3f9   :  { %v1002_v62 = vmax.f32 %v932_v60, 0.0  ;;  %v947_v0 = vadd.f32 %v2961_v61, %v2344_v50  ;;  %3090 = vmatpush3.msra.mxu1 %v1404_v38  ;;  %v1389_v38 = vld [vmem:[#allocation2 + $0x300] sm:$0xff] }
 0x3fa   :  { %v941_v1 = vpop.f32.mrf.mxu0  ;;  %3091 = vmatprep.subr.mxu1 %v1403_v39 }
 0x3fb   :  { %v942_v2 = vadd.f32 %v2344_v50, %v941_v1  ;;  %3012 = vmatprep.mubr.f32.mxu1 %v1002_v62  ;;  %v1005_v5 = vmax.f32 %v947_v0, 0.0  ;;  %3092 = vmatpush3.msra.mxu1 %v1403_v39  ;;  %v1590_v39 = vld [vmem:[#allocation2 + $0x3f8] sm:$0xff] }
 0x3fc   :  { %v2964_v3 = vpop.f32.mrf.mxu0  ;;  %3013 = vmatmul.mubr.f32.gmra.mxu1 %v1003_v63  ;;  %3093 = vmatprep.subr.mxu1 %v1402_v40 }
 0x3fd   :  { %v1004_v4 = vmax.f32 %v942_v2, 0.0  ;;  %v957_v6 = vadd.f32 %v2964_v3, %v2344_v50  ;;  %3094 = vmatpush3.msra.mxu1 %v1402_v40  ;;  %v1589_v40 = vld [vmem:[#allocation2 + $0x3f0] sm:$0xff]  ;;  %3145 = vmatprep.subr.mxu0 %v1590_v39 }
 0x3fe   :  { %v951_v7 = vpop.f32.mrf.mxu0  ;;  %3095 = vmatprep.subr.mxu1 %v1401_v41 }
 0x3ff   :  { %v952_v8 = vadd.f32 %v2344_v50, %v951_v7  ;;  %3015 = vmatprep.mubr.f32.mxu1 %v1004_v4  ;;  %v1007_v11 = vmax.f32 %v957_v6, 0.0  ;;  %3096 = vmatpush3.msra.mxu1 %v1401_v41  ;;  %v1588_v41 = vld [vmem:[#allocation2 + $0x3e8] sm:$0xff] }
 0x400   :  { %v2967_v9 = vpop.f32.mrf.mxu0  ;;  %3016 = vmatmul.mubr.f32.gmra.mxu1 %v1005_v5  ;;  %3097 = vmatprep.subr.mxu1 %v1400_v42 }
 0x401   :  { %v1006_v10 = vmax.f32 %v952_v8, 0.0  ;;  %v967_v12 = vadd.f32 %v2967_v9, %v2344_v50  ;;  %3098 = vmatpush3.msra.mxu1 %v1400_v42  ;;  %v1587_v42 = vld [vmem:[#allocation2 + $0x3e0] sm:$0xff] }
 0x402   :  { %v961_v13 = vpop.f32.mrf.mxu0  ;;  %3099 = vmatprep.subr.mxu1 %v1399_v43 }
 0x403   :  { %v962_v14 = vadd.f32 %v2344_v50, %v961_v13  ;;  %3018 = vmatprep.mubr.f32.mxu1 %v1006_v10  ;;  %v1009_v17 = vmax.f32 %v967_v12, 0.0  ;;  %3100 = vmatpush3.msra.mxu1 %v1399_v43  ;;  %v1586_v43 = vld [vmem:[#allocation2 + $0x3d8] sm:$0xff] }
 0x404   :  { %v2970_v15 = vpop.f32.mrf.mxu0  ;;  %3019 = vmatmul.mubr.f32.gmra.mxu1 %v1007_v11  ;;  %3101 = vmatprep.subr.mxu1 %v1398_v44 }
 0x405   :  { %v1008_v16 = vmax.f32 %v962_v14, 0.0  ;;  %v977_v18 = vadd.f32 %v2970_v15, %v2344_v50  ;;  %3102 = vmatpush3.msra.mxu1 %v1398_v44  ;;  %v1585_v44 = vld [vmem:[#allocation2 + $0x3d0] sm:$0xff] }
 0x406   :  { %v971_v19 = vpop.f32.mrf.mxu0  ;;  %3103 = vmatprep.subr.mxu1 %v1397_v45 }
 0x407   :  { %v972_v20 = vadd.f32 %v2344_v50, %v971_v19  ;;  %3021 = vmatprep.mubr.f32.mxu1 %v1008_v16  ;;  %v1011_v23 = vmax.f32 %v977_v18, 0.0  ;;  %3104 = vmatpush3.msra.mxu1 %v1397_v45  ;;  %v1584_v45 = vld [vmem:[#allocation2 + $0x3c8] sm:$0xff] }
 0x408   :  { %v2973_v21 = vpop.f32.mrf.mxu0  ;;  %3022 = vmatmul.mubr.f32.gmra.mxu1 %v1009_v17  ;;  %3105 = vmatprep.subr.mxu1 %v1396_v46 }
 0x409   :  { %v1010_v22 = vmax.f32 %v972_v20, 0.0  ;;  %v987_v24 = vadd.f32 %v2973_v21, %v2344_v50  ;;  %3106 = vmatpush3.msra.mxu1 %v1396_v46  ;;  %v1583_v46 = vld [vmem:[#allocation2 + $0x3c0] sm:$0xff] }
 0x40a   :  { %v981_v25 = vpop.f32.mrf.mxu0  ;;  %3107 = vmatprep.subr.mxu1 %v1395_v47 }
 0x40b   :  { %v982_v26 = vadd.f32 %v2344_v50, %v981_v25  ;;  %3024 = vmatprep.mubr.f32.mxu1 %v1010_v22  ;;  %v1013_v29 = vmax.f32 %v987_v24, 0.0  ;;  %3108 = vmatpush3.msra.mxu1 %v1395_v47  ;;  %v1582_v47 = vld [vmem:[#allocation2 + $0x3b8] sm:$0xff] }
 0x40c   :  { %v2976_v27 = vpop.f32.mrf.mxu0  ;;  %3025 = vmatmul.mubr.f32.gmra.mxu1 %v1011_v23  ;;  %3109 = vmatprep.subr.mxu1 %v1394_v48 }
 0x40d   :  { %v1012_v28 = vmax.f32 %v982_v26, 0.0  ;;  %v997_v30 = vadd.f32 %v2976_v27, %v2344_v50  ;;  %3110 = vmatpush3.msra.mxu1 %v1394_v48  ;;  %v1581_v48 = vld [vmem:[#allocation2 + $0x3b0] sm:$0xff] }
 0x40e   :  { %v991_v31 = vpop.f32.mrf.mxu0  ;;  %3111 = vmatprep.subr.mxu1 %v1393_v49 }
 0x40f   :  { %v992_v32 = vadd.f32 %v2344_v50, %v991_v31  ;;  %3027 = vmatprep.mubr.f32.mxu1 %v1012_v28  ;;  %v1015_v34 = vmax.f32 %v997_v30, 0.0  ;;  %v1392_v50 = vld [vmem:[#allocation2 + $0x318] sm:$0xff]  ;;  %3112 = vmatpush3.msra.mxu1 %v1393_v49  ;;  %v1580_v49 = vld [vmem:[#allocation2 + $0x3a8] sm:$0xff] }
 0x410   :  { %3028 = vmatmul.mubr.f32.gmra.mxu1 %v1013_v29  ;;  %3113 = vmatprep.subr.mxu1 %v1392_v50 }
 0x411   :  { %v1014_v33 = vmax.f32 %v992_v32, 0.0  ;;  %3114 = vmatpush3.msra.mxu1 %v1392_v50  ;;  %v1579_v50 = vld [vmem:[#allocation2 + $0x3a0] sm:$0xff] }
 0x412   :  { %3115 = vmatprep.subr.mxu1 %v1391_v36 }
 0x413   :  { %3030 = vmatprep.mubr.f32.mxu1 %v1014_v33  ;;  %3116 = vmatpush3.msra.mxu1 %v1391_v36 }
 0x414   :  { %3031 = vmatmul.mubr.f32.gmra.mxu1 %v1015_v34  ;;  %3117 = vmatprep.subr.mxu1 %v1390_v37 }
 0x415   :  { %3118 = vmatpush3.msra.mxu1 %v1390_v37  ;;  %v1577_v37 = vld [vmem:[#allocation2 + $0x390] sm:$0xff] }
 0x416   :  { %3119 = vmatprep.subr.mxu1 %v1389_v38 }
 0x417   :  { %3120 = vmatpush3.msra.mxu1 %v1389_v38  ;;  %v1576_v38 = vld [vmem:[#allocation2 + $0x388] sm:$0xff] }
 0x4b8   :  { %v3011_v52 = vpop.f32.mrf.mxu1 }
 0x4b9   :  { %v1113_v53 = vadd.f32 %v3011_v52, %v2346_v51  ;;  %v2348_v52 = vld [vmem:[%s3741_s4 + $0x5] ss:$0 sm:$0xff] }
 0x4ba   :  { %v1107_v54 = vpop.f32.mrf.mxu1 }
 0x4bb   :  { %v1108_v55 = vadd.f32 %v2346_v51, %v1107_v54  ;;  %v1187_v58 = vmax.f32 %v1113_v53, 0.0 }
 0x4bc   :  { %v3014_v56 = vpop.f32.mrf.mxu1 }
 0x4bd   :  { %v1186_v57 = vmax.f32 %v1108_v55, 0.0  ;;  %v1123_v59 = vadd.f32 %v3014_v56, %v2346_v51 }
 0x4be   :  { %v1117_v60 = vpop.f32.mrf.mxu1 }
 0x4bf   :  { %v1118_v61 = vadd.f32 %v2346_v51, %v1117_v60  ;;  %3065 = vmatprep.mubr.f32.mxu0 %v1186_v57  ;;  %v1189_v0 = vmax.f32 %v1123_v59, 0.0 }
 0x4c0   :  { %v3017_v62 = vpop.f32.mrf.mxu1  ;;  %3066 = vmatmul.mubr.f32.vlgmr.msra.gmra.mxu0 %v1187_v58 }
 0x4c1   :  { %v1188_v63 = vmax.f32 %v1118_v61, 0.0  ;;  %v1133_v1 = vadd.f32 %v3017_v62, %v2346_v51  ;;  %3146 = vmatpush3.msra.mxu0 %v1590_v39  ;;  %v1575_v39 = vld [vmem:[#allocation2 + $0x380] sm:$0xff] }
 0x4c2   :  { %v1127_v2 = vpop.f32.mrf.mxu1  ;;  %3147 = vmatprep.subr.mxu0 %v1589_v40 }
 0x4c3   :  { %v1128_v3 = vadd.f32 %v2346_v51, %v1127_v2  ;;  %3068 = vmatprep.mubr.f32.mxu0 %v1188_v63  ;;  %v1191_v6 = vmax.f32 %v1133_v1, 0.0  ;;  %3148 = vmatpush3.msra.mxu0 %v1589_v40  ;;  %v1776_v40 = vld [vmem:[#allocation2 + $0x478] sm:$0xff] }
 0x4c4   :  { %v3020_v4 = vpop.f32.mrf.mxu1  ;;  %3069 = vmatmul.mubr.f32.gmra.mxu0 %v1189_v0  ;;  %3149 = vmatprep.subr.mxu0 %v1588_v41 }
 0x4c5   :  { %v1190_v5 = vmax.f32 %v1128_v3, 0.0  ;;  %v1143_v7 = vadd.f32 %v3020_v4, %v2346_v51  ;;  %3150 = vmatpush3.msra.mxu0 %v1588_v41  ;;  %v1775_v41 = vld [vmem:[#allocation2 + $0x470] sm:$0xff]  ;;  %3201 = vmatprep.subr.mxu1 %v1776_v40 }
 0x4c6   :  { %v1137_v8 = vpop.f32.mrf.mxu1  ;;  %3151 = vmatprep.subr.mxu0 %v1587_v42 }
 0x4c7   :  { %v1138_v9 = vadd.f32 %v2346_v51, %v1137_v8  ;;  %3071 = vmatprep.mubr.f32.mxu0 %v1190_v5  ;;  %v1193_v12 = vmax.f32 %v1143_v7, 0.0  ;;  %3152 = vmatpush3.msra.mxu0 %v1587_v42  ;;  %v1774_v42 = vld [vmem:[#allocation2 + $0x468] sm:$0xff] }
 0x4c8   :  { %v3023_v10 = vpop.f32.mrf.mxu1  ;;  %3072 = vmatmul.mubr.f32.gmra.mxu0 %v1191_v6  ;;  %3153 = vmatprep.subr.mxu0 %v1586_v43 }
 0x4c9   :  { %v1192_v11 = vmax.f32 %v1138_v9, 0.0  ;;  %v1153_v13 = vadd.f32 %v3023_v10, %v2346_v51  ;;  %3154 = vmatpush3.msra.mxu0 %v1586_v43  ;;  %v1773_v43 = vld [vmem:[#allocation2 + $0x460] sm:$0xff] }
 0x4ca   :  { %v1147_v14 = vpop.f32.mrf.mxu1  ;;  %3155 = vmatprep.subr.mxu0 %v1585_v44 }
 0x4cb   :  { %v1148_v15 = vadd.f32 %v2346_v51, %v1147_v14  ;;  %3074 = vmatprep.mubr.f32.mxu0 %v1192_v11  ;;  %v1195_v18 = vmax.f32 %v1153_v13, 0.0  ;;  %3156 = vmatpush3.msra.mxu0 %v1585_v44  ;;  %v1772_v44 = vld [vmem:[#allocation2 + $0x458] sm:$0xff] }
 0x4cc   :  { %v3026_v16 = vpop.f32.mrf.mxu1  ;;  %3075 = vmatmul.mubr.f32.gmra.mxu0 %v1193_v12  ;;  %3157 = vmatprep.subr.mxu0 %v1584_v45 }
 0x4cd   :  { %v1194_v17 = vmax.f32 %v1148_v15, 0.0  ;;  %v1163_v19 = vadd.f32 %v3026_v16, %v2346_v51  ;;  %3158 = vmatpush3.msra.mxu0 %v1584_v45  ;;  %v1771_v45 = vld [vmem:[#allocation2 + $0x450] sm:$0xff] }
 0x4ce   :  { %v1157_v20 = vpop.f32.mrf.mxu1  ;;  %3159 = vmatprep.subr.mxu0 %v1583_v46 }
 0x4cf   :  { %v1158_v21 = vadd.f32 %v2346_v51, %v1157_v20  ;;  %3077 = vmatprep.mubr.f32.mxu0 %v1194_v17  ;;  %v1197_v24 = vmax.f32 %v1163_v19, 0.0  ;;  %3160 = vmatpush3.msra.mxu0 %v1583_v46  ;;  %v1770_v46 = vld [vmem:[#allocation2 + $0x448] sm:$0xff] }
 0x4d0   :  { %v3029_v22 = vpop.f32.mrf.mxu1  ;;  %3078 = vmatmul.mubr.f32.gmra.mxu0 %v1195_v18  ;;  %3161 = vmatprep.subr.mxu0 %v1582_v47 }
 0x4d1   :  { %v1196_v23 = vmax.f32 %v1158_v21, 0.0  ;;  %v1173_v25 = vadd.f32 %v3029_v22, %v2346_v51  ;;  %3162 = vmatpush3.msra.mxu0 %v1582_v47  ;;  %v1769_v47 = vld [vmem:[#allocation2 + $0x440] sm:$0xff] }
 0x4d2   :  { %v1167_v26 = vpop.f32.mrf.mxu1  ;;  %3163 = vmatprep.subr.mxu0 %v1581_v48 }
 0x4d3   :  { %v1168_v27 = vadd.f32 %v2346_v51, %v1167_v26  ;;  %3080 = vmatprep.mubr.f32.mxu0 %v1196_v23  ;;  %v1199_v30 = vmax.f32 %v1173_v25, 0.0  ;;  %3164 = vmatpush3.msra.mxu0 %v1581_v48  ;;  %v1768_v48 = vld [vmem:[#allocation2 + $0x438] sm:$0xff] }
 0x4d4   :  { %v3032_v28 = vpop.f32.mrf.mxu1  ;;  %3081 = vmatmul.mubr.f32.gmra.mxu0 %v1197_v24  ;;  %3165 = vmatprep.subr.mxu0 %v1580_v49 }
 0x4d5   :  { %v1198_v29 = vmax.f32 %v1168_v27, 0.0  ;;  %v1183_v31 = vadd.f32 %v3032_v28, %v2346_v51  ;;  %3166 = vmatpush3.msra.mxu0 %v1580_v49  ;;  %v1767_v49 = vld [vmem:[#allocation2 + $0x430] sm:$0xff] }
 0x4d6   :  { %v1177_v32 = vpop.f32.mrf.mxu1  ;;  %3167 = vmatprep.subr.mxu0 %v1579_v50 }
 0x4d7   :  { %v1178_v33 = vadd.f32 %v2346_v51, %v1177_v32  ;;  %3083 = vmatprep.mubr.f32.mxu0 %v1198_v29  ;;  %v1201_v35 = vmax.f32 %v1183_v31, 0.0  ;;  %v1578_v51 = vld [vmem:[#allocation2 + $0x398] sm:$0xff]  ;;  %3168 = vmatpush3.msra.mxu0 %v1579_v50  ;;  %v1766_v50 = vld [vmem:[#allocation2 + $0x428] sm:$0xff] }
 0x4d8   :  { %3084 = vmatmul.mubr.f32.gmra.mxu0 %v1199_v30  ;;  %3169 = vmatprep.subr.mxu0 %v1578_v51 }
 0x4d9   :  { %v1200_v34 = vmax.f32 %v1178_v33, 0.0  ;;  %3170 = vmatpush3.msra.mxu0 %v1578_v51  ;;  %v1765_v51 = vld [vmem:[#allocation2 + $0x420] sm:$0xff] }
 0x4da   :  { %3171 = vmatprep.subr.mxu0 %v1577_v37 }
 0x4db   :  { %3086 = vmatprep.mubr.f32.mxu0 %v1200_v34  ;;  %3172 = vmatpush3.msra.mxu0 %v1577_v37 }
 0x4dc   :  { %3087 = vmatmul.mubr.f32.gmra.mxu0 %v1201_v35  ;;  %3173 = vmatprep.subr.mxu0 %v1576_v38 }
 0x4dd   :  { %3174 = vmatpush3.msra.mxu0 %v1576_v38  ;;  %v1763_v38 = vld [vmem:[#allocation2 + $0x410] sm:$0xff] }
 0x4de   :  { %3175 = vmatprep.subr.mxu0 %v1575_v39 }
 0x4df   :  { %3176 = vmatpush3.msra.mxu0 %v1575_v39  ;;  %v1762_v39 = vld [vmem:[#allocation2 + $0x408] sm:$0xff] }
 0x580   :  { %v3067_v53 = vpop.f32.mrf.mxu0 }
 0x581   :  { %v1299_v54 = vadd.f32 %v3067_v53, %v2348_v52  ;;  %v2350_v53 = vld [vmem:[%s3741_s4 + $0x6] ss:$0 sm:$0xff] }
 0x582   :  { %v1293_v55 = vpop.f32.mrf.mxu0 }
 0x583   :  { %v1294_v56 = vadd.f32 %v2348_v52, %v1293_v55  ;;  %v1373_v59 = vmax.f32 %v1299_v54, 0.0 }
 0x584   :  { %v3070_v57 = vpop.f32.mrf.mxu0 }
 0x585   :  { %v1372_v58 = vmax.f32 %v1294_v56, 0.0  ;;  %v1309_v60 = vadd.f32 %v3070_v57, %v2348_v52 }
 0x586   :  { %v1303_v61 = vpop.f32.mrf.mxu0 }
 0x587   :  { %v1304_v62 = vadd.f32 %v2348_v52, %v1303_v61  ;;  %3121 = vmatprep.mubr.f32.mxu1 %v1372_v58  ;;  %v1375_v1 = vmax.f32 %v1309_v60, 0.0 }
 0x588   :  { %v3073_v63 = vpop.f32.mrf.mxu0  ;;  %3122 = vmatmul.mubr.f32.vlgmr.msra.gmra.mxu1 %v1373_v59 }
 0x589   :  { %v1374_v0 = vmax.f32 %v1304_v62, 0.0  ;;  %v1319_v2 = vadd.f32 %v3073_v63, %v2348_v52  ;;  %3202 = vmatpush3.msra.mxu1 %v1776_v40  ;;  %v1761_v40 = vld [vmem:[#allocation2 + $0x400] sm:$0xff] }
 0x58a   :  { %v1313_v3 = vpop.f32.mrf.mxu0  ;;  %3203 = vmatprep.subr.mxu1 %v1775_v41 }
 0x58b   :  { %v1314_v4 = vadd.f32 %v2348_v52, %v1313_v3  ;;  %3124 = vmatprep.mubr.f32.mxu1 %v1374_v0  ;;  %v1377_v7 = vmax.f32 %v1319_v2, 0.0  ;;  %3204 = vmatpush3.msra.mxu1 %v1775_v41  ;;  %v1962_v41 = vld [vmem:[#allocation2 + $0x4f8] sm:$0xff] }
 0x58c   :  { %v3076_v5 = vpop.f32.mrf.mxu0  ;;  %3125 = vmatmul.mubr.f32.gmra.mxu1 %v1375_v1  ;;  %3205 = vmatprep.subr.mxu1 %v1774_v42 }
 0x58d   :  { %v1376_v6 = vmax.f32 %v1314_v4, 0.0  ;;  %v1329_v8 = vadd.f32 %v3076_v5, %v2348_v52  ;;  %3206 = vmatpush3.msra.mxu1 %v1774_v42  ;;  %v1961_v42 = vld [vmem:[#allocation2 + $0x4f0] sm:$0xff]  ;;  %3257 = vmatprep.subr.mxu0 %v1962_v41 }
 0x58e   :  { %v1323_v9 = vpop.f32.mrf.mxu0  ;;  %3207 = vmatprep.subr.mxu1 %v1773_v43 }
 0x58f   :  { %v1324_v10 = vadd.f32 %v2348_v52, %v1323_v9  ;;  %3127 = vmatprep.mubr.f32.mxu1 %v1376_v6  ;;  %v1379_v13 = vmax.f32 %v1329_v8, 0.0  ;;  %3208 = vmatpush3.msra.mxu1 %v1773_v43  ;;  %v1960_v43 = vld [vmem:[#allocation2 + $0x4e8] sm:$0xff] }
 0x590   :  { %v3079_v11 = vpop.f32.mrf.mxu0  ;;  %3128 = vmatmul.mubr.f32.gmra.mxu1 %v1377_v7  ;;  %3209 = vmatprep.subr.mxu1 %v1772_v44 }
 0x591   :  { %v1378_v12 = vmax.f32 %v1324_v10, 0.0  ;;  %v1339_v14 = vadd.f32 %v3079_v11, %v2348_v52  ;;  %3210 = vmatpush3.msra.mxu1 %v1772_v44  ;;  %v1959_v44 = vld [vmem:[#allocation2 + $0x4e0] sm:$0xff] }
 0x592   :  { %v1333_v15 = vpop.f32.mrf.mxu0  ;;  %3211 = vmatprep.subr.mxu1 %v1771_v45 }
 0x593   :  { %v1334_v16 = vadd.f32 %v2348_v52, %v1333_v15  ;;  %3130 = vmatprep.mubr.f32.mxu1 %v1378_v12  ;;  %v1381_v19 = vmax.f32 %v1339_v14, 0.0  ;;  %3212 = vmatpush3.msra.mxu1 %v1771_v45  ;;  %v1958_v45 = vld [vmem:[#allocation2 + $0x4d8] sm:$0xff] }
 0x594   :  { %v3082_v17 = vpop.f32.mrf.mxu0  ;;  %3131 = vmatmul.mubr.f32.gmra.mxu1 %v1379_v13  ;;  %3213 = vmatprep.subr.mxu1 %v1770_v46 }
 0x595   :  { %v1380_v18 = vmax.f32 %v1334_v16, 0.0  ;;  %v1349_v20 = vadd.f32 %v3082_v17, %v2348_v52  ;;  %3214 = vmatpush3.msra.mxu1 %v1770_v46  ;;  %v1957_v46 = vld [vmem:[#allocation2 + $0x4d0] sm:$0xff] }
 0x596   :  { %v1343_v21 = vpop.f32.mrf.mxu0  ;;  %3215 = vmatprep.subr.mxu1 %v1769_v47 }
 0x597   :  { %v1344_v22 = vadd.f32 %v2348_v52, %v1343_v21  ;;  %3133 = vmatprep.mubr.f32.mxu1 %v1380_v18  ;;  %v1383_v25 = vmax.f32 %v1349_v20, 0.0  ;;  %3216 = vmatpush3.msra.mxu1 %v1769_v47  ;;  %v1956_v47 = vld [vmem:[#allocation2 + $0x4c8] sm:$0xff] }
 0x598   :  { %v3085_v23 = vpop.f32.mrf.mxu0  ;;  %3134 = vmatmul.mubr.f32.gmra.mxu1 %v1381_v19  ;;  %3217 = vmatprep.subr.mxu1 %v1768_v48 }
 0x599   :  { %v1382_v24 = vmax.f32 %v1344_v22, 0.0  ;;  %v1359_v26 = vadd.f32 %v3085_v23, %v2348_v52  ;;  %3218 = vmatpush3.msra.mxu1 %v1768_v48  ;;  %v1955_v48 = vld [vmem:[#allocation2 + $0x4c0] sm:$0xff] }
 0x59a   :  { %v1353_v27 = vpop.f32.mrf.mxu0  ;;  %3219 = vmatprep.subr.mxu1 %v1767_v49 }
 0x59b   :  { %v1354_v28 = vadd.f32 %v2348_v52, %v1353_v27  ;;  %3136 = vmatprep.mubr.f32.mxu1 %v1382_v24  ;;  %v1385_v31 = vmax.f32 %v1359_v26, 0.0  ;;  %3220 = vmatpush3.msra.mxu1 %v1767_v49  ;;  %v1954_v49 = vld [vmem:[#allocation2 + $0x4b8] sm:$0xff] }
 0x59c   :  { %v3088_v29 = vpop.f32.mrf.mxu0  ;;  %3137 = vmatmul.mubr.f32.gmra.mxu1 %v1383_v25  ;;  %3221 = vmatprep.subr.mxu1 %v1766_v50 }
 0x59d   :  { %v1384_v30 = vmax.f32 %v1354_v28, 0.0  ;;  %v1369_v32 = vadd.f32 %v3088_v29, %v2348_v52  ;;  %3222 = vmatpush3.msra.mxu1 %v1766_v50  ;;  %v1953_v50 = vld [vmem:[#allocation2 + $0x4b0] sm:$0xff] }
 0x59e   :  { %v1363_v33 = vpop.f32.mrf.mxu0  ;;  %3223 = vmatprep.subr.mxu1 %v1765_v51 }
 0x59f   :  { %v1364_v34 = vadd.f32 %v2348_v52, %v1363_v33  ;;  %3139 = vmatprep.mubr.f32.mxu1 %v1384_v30  ;;  %v1387_v36 = vmax.f32 %v1369_v32, 0.0  ;;  %v1764_v52 = vld [vmem:[#allocation2 + $0x418] sm:$0xff]  ;;  %3224 = vmatpush3.msra.mxu1 %v1765_v51  ;;  %v1952_v51 = vld [vmem:[#allocation2 + $0x4a8] sm:$0xff] }
 0x5a0   :  { %3140 = vmatmul.mubr.f32.gmra.mxu1 %v1385_v31  ;;  %3225 = vmatprep.subr.mxu1 %v1764_v52 }
 0x5a1   :  { %v1386_v35 = vmax.f32 %v1364_v34, 0.0  ;;  %3226 = vmatpush3.msra.mxu1 %v1764_v52  ;;  %v1951_v52 = vld [vmem:[#allocation2 + $0x4a0] sm:$0xff] }
 0x5a2   :  { %3227 = vmatprep.subr.mxu1 %v1763_v38 }
 0x5a3   :  { %3142 = vmatprep.mubr.f32.mxu1 %v1386_v35  ;;  %3228 = vmatpush3.msra.mxu1 %v1763_v38 }
 0x5a4   :  { %3143 = vmatmul.mubr.f32.gmra.mxu1 %v1387_v36  ;;  %3229 = vmatprep.subr.mxu1 %v1762_v39 }
 0x5a5   :  { %3230 = vmatpush3.msra.mxu1 %v1762_v39  ;;  %v1949_v39 = vld [vmem:[#allocation2 + $0x490] sm:$0xff] }
 0x5a6   :  { %3231 = vmatprep.subr.mxu1 %v1761_v40 }
 0x5a7   :  { %3232 = vmatpush3.msra.mxu1 %v1761_v40  ;;  %v1948_v40 = vld [vmem:[#allocation2 + $0x488] sm:$0xff] }
 0x648   :  { %v3123_v54 = vpop.f32.mrf.mxu1 }
 0x649   :  { %v1485_v55 = vadd.f32 %v3123_v54, %v2350_v53  ;;  %v2352_v54 = vld [vmem:[%s3741_s4 + $0x7] ss:$0 sm:$0xff] }
 0x64a   :  { %v1479_v56 = vpop.f32.mrf.mxu1 }
 0x64b   :  { %v1480_v57 = vadd.f32 %v2350_v53, %v1479_v56  ;;  %v1559_v60 = vmax.f32 %v1485_v55, 0.0 }
 0x64c   :  { %v3126_v58 = vpop.f32.mrf.mxu1 }
 0x64d   :  { %v1558_v59 = vmax.f32 %v1480_v57, 0.0  ;;  %v1495_v61 = vadd.f32 %v3126_v58, %v2350_v53 }
 0x64e   :  { %v1489_v62 = vpop.f32.mrf.mxu1 }
 0x64f   :  { %v1490_v63 = vadd.f32 %v2350_v53, %v1489_v62  ;;  %3177 = vmatprep.mubr.f32.mxu0 %v1558_v59  ;;  %v1561_v2 = vmax.f32 %v1495_v61, 0.0 }
 0x650   :  { %v3129_v0 = vpop.f32.mrf.mxu1  ;;  %3178 = vmatmul.mubr.f32.vlgmr.msra.gmra.mxu0 %v1559_v60 }
 0x651   :  { %v1560_v1 = vmax.f32 %v1490_v63, 0.0  ;;  %v1505_v3 = vadd.f32 %v3129_v0, %v2350_v53  ;;  %3258 = vmatpush3.msra.mxu0 %v1962_v41  ;;  %v1947_v41 = vld [vmem:[#allocation2 + $0x480] sm:$0xff] }
 0x652   :  { %v1499_v4 = vpop.f32.mrf.mxu1  ;;  %3259 = vmatprep.subr.mxu0 %v1961_v42 }
 0x653   :  { %v1500_v5 = vadd.f32 %v2350_v53, %v1499_v4  ;;  %3180 = vmatprep.mubr.f32.mxu0 %v1560_v1  ;;  %v1563_v8 = vmax.f32 %v1505_v3, 0.0  ;;  %3260 = vmatpush3.msra.mxu0 %v1961_v42  ;;  %v2147_v42 = vld [vmem:[%s3742_s5 + $0x78] sm:$0xff] }
 0x654   :  { %v3132_v6 = vpop.f32.mrf.mxu1  ;;  %3181 = vmatmul.mubr.f32.gmra.mxu0 %v1561_v2  ;;  %3261 = vmatprep.subr.mxu0 %v1960_v43 }
 0x655   :  { %v1562_v7 = vmax.f32 %v1500_v5, 0.0  ;;  %v1515_v9 = vadd.f32 %v3132_v6, %v2350_v53  ;;  %3262 = vmatpush3.msra.mxu0 %v1960_v43  ;;  %3369 = vmatprep.subr.mxu1 %v2147_v42  ;;  %v2146_v43 = vld [vmem:[%s3742_s5 + $0x70] sm:$0xff] }
 0x656   :  { %v1509_v10 = vpop.f32.mrf.mxu1  ;;  %3263 = vmatprep.subr.mxu0 %v1959_v44 }
 0x657   :  { %v1510_v11 = vadd.f32 %v2350_v53, %v1509_v10  ;;  %3183 = vmatprep.mubr.f32.mxu0 %v1562_v7  ;;  %v1565_v14 = vmax.f32 %v1515_v9, 0.0  ;;  %3264 = vmatpush3.msra.mxu0 %v1959_v44  ;;  %v2145_v44 = vld [vmem:[%s3742_s5 + $0x68] sm:$0xff] }
 0x658   :  { %v3135_v12 = vpop.f32.mrf.mxu1  ;;  %3184 = vmatmul.mubr.f32.gmra.mxu0 %v1563_v8  ;;  %3265 = vmatprep.subr.mxu0 %v1958_v45 }
 0x659   :  { %v1564_v13 = vmax.f32 %v1510_v11, 0.0  ;;  %v1525_v15 = vadd.f32 %v3135_v12, %v2350_v53  ;;  %3266 = vmatpush3.msra.mxu0 %v1958_v45  ;;  %v2144_v45 = vld [vmem:[%s3742_s5 + $0x60] sm:$0xff] }
 0x65a   :  { %v1519_v16 = vpop.f32.mrf.mxu1  ;;  %3267 = vmatprep.subr.mxu0 %v1957_v46 }
 0x65b   :  { %v1520_v17 = vadd.f32 %v2350_v53, %v1519_v16  ;;  %3186 = vmatprep.mubr.f32.mxu0 %v1564_v13  ;;  %v1567_v20 = vmax.f32 %v1525_v15, 0.0  ;;  %3268 = vmatpush3.msra.mxu0 %v1957_v46  ;;  %v3581_v46 = vld [vmem:[%s3742_s5 + $0x58] sm:$0xff] }
 0x65c   :  { %v3138_v18 = vpop.f32.mrf.mxu1  ;;  %3187 = vmatmul.mubr.f32.gmra.mxu0 %v1565_v14  ;;  %3269 = vmatprep.subr.mxu0 %v1956_v47 }
 0x65d   :  { %v1566_v19 = vmax.f32 %v1520_v17, 0.0  ;;  %v1535_v21 = vadd.f32 %v3138_v18, %v2350_v53  ;;  %3270 = vmatpush3.msra.mxu0 %v1956_v47  ;;  %v3587_v47 = vld [vmem:[%s3742_s5 + $0x50] sm:$0xff] }
 0x65e   :  { %v1529_v22 = vpop.f32.mrf.mxu1  ;;  %3271 = vmatprep.subr.mxu0 %v1955_v48 }
 0x65f   :  { %v1530_v23 = vadd.f32 %v2350_v53, %v1529_v22  ;;  %3189 = vmatprep.mubr.f32.mxu0 %v1566_v19  ;;  %v1569_v26 = vmax.f32 %v1535_v21, 0.0  ;;  %3272 = vmatpush3.msra.mxu0 %v1955_v48  ;;  %v3594_v48 = vld [vmem:[%s3742_s5 + $0x48] sm:$0xff] }
 0x660   :  { %v3141_v24 = vpop.f32.mrf.mxu1  ;;  %3190 = vmatmul.mubr.f32.gmra.mxu0 %v1567_v20  ;;  %3273 = vmatprep.subr.mxu0 %v1954_v49 }
 0x661   :  { %v1568_v25 = vmax.f32 %v1530_v23, 0.0  ;;  %v1545_v27 = vadd.f32 %v3141_v24, %v2350_v53  ;;  %3274 = vmatpush3.msra.mxu0 %v1954_v49  ;;  %v3601_v49 = vld [vmem:[%s3742_s5 + $0x40] sm:$0xff] }
 0x662   :  { %v1539_v28 = vpop.f32.mrf.mxu1  ;;  %3275 = vmatprep.subr.mxu0 %v1953_v50 }
 0x663   :  { %v1540_v29 = vadd.f32 %v2350_v53, %v1539_v28  ;;  %3192 = vmatprep.mubr.f32.mxu0 %v1568_v25  ;;  %v1571_v32 = vmax.f32 %v1545_v27, 0.0  ;;  %3276 = vmatpush3.msra.mxu0 %v1953_v50  ;;  %v3608_v50 = vld [vmem:[%s3742_s5 + $0x38] sm:$0xff] }
 0x664   :  { %v3144_v30 = vpop.f32.mrf.mxu1  ;;  %3193 = vmatmul.mubr.f32.gmra.mxu0 %v1569_v26  ;;  %3277 = vmatprep.subr.mxu0 %v1952_v51 }
 0x665   :  { %v1570_v31 = vmax.f32 %v1540_v29, 0.0  ;;  %v1555_v33 = vadd.f32 %v3144_v30, %v2350_v53  ;;  %3278 = vmatpush3.msra.mxu0 %v1952_v51  ;;  %v3615_v51 = vld [vmem:[%s3742_s5 + $0x30] sm:$0xff] }
 0x666   :  { %v1549_v34 = vpop.f32.mrf.mxu1  ;;  %3279 = vmatprep.subr.mxu0 %v1951_v52 }
 0x667   :  { %v1550_v35 = vadd.f32 %v2350_v53, %v1549_v34  ;;  %3195 = vmatprep.mubr.f32.mxu0 %v1570_v31  ;;  %v1573_v37 = vmax.f32 %v1555_v33, 0.0  ;;  %v1950_v53 = vld [vmem:[#allocation2 + $0x498] sm:$0xff]  ;;  %3280 = vmatpush3.msra.mxu0 %v1951_v52  ;;  %v3622_v52 = vld [vmem:[%s3742_s5 + $0x28] sm:$0xff] }
 0x668   :  { %3196 = vmatmul.mubr.f32.gmra.mxu0 %v1571_v32  ;;  %3281 = vmatprep.subr.mxu0 %v1950_v53 }
 0x669   :  { %v1572_v36 = vmax.f32 %v1550_v35, 0.0  ;;  %3282 = vmatpush3.msra.mxu0 %v1950_v53  ;;  %v3629_v53 = vld [vmem:[%s3742_s5 + $0x20] sm:$0xff] }
 0x66a   :  { %3283 = vmatprep.subr.mxu0 %v1949_v39 }
 0x66b   :  { %3198 = vmatprep.mubr.f32.mxu0 %v1572_v36  ;;  %3284 = vmatpush3.msra.mxu0 %v1949_v39  ;;  %v2135_v39 = vld [vmem:[%s3742_s5 + $0x18] sm:$0xff] }
 0x66c   :  { %3199 = vmatmul.mubr.f32.gmra.mxu0 %v1573_v37  ;;  %3285 = vmatprep.subr.mxu0 %v1948_v40 }
 0x66d   :  { %3286 = vmatpush3.msra.mxu0 %v1948_v40  ;;  %v2134_v40 = vld [vmem:[%s3742_s5 + $0x10] sm:$0xff] }
 0x66e   :  { %3287 = vmatprep.subr.mxu0 %v1947_v41 }
 0x66f   :  { %3288 = vmatpush3.msra.mxu0 %v1947_v41  ;;  %v2133_v41 = vld [vmem:[%s3742_s5 + $0x8] sm:$0xff] }
 0x670   :  { %3313 = vmatprep.subr.mxu0 %v2147_v42 }
 0x710   :  { %v3179_v55 = vpop.f32.mrf.mxu0 }
 0x711   :  { %v1671_v56 = vadd.f32 %v3179_v55, %v2352_v54 }
 0x712   :  { %v1665_v57 = vpop.f32.mrf.mxu0 }
 0x713   :  { %v1666_v58 = vadd.f32 %v2352_v54, %v1665_v57  ;;  %v1745_v61 = vmax.f32 %v1671_v56, 0.0 }
 0x714   :  { %v3182_v59 = vpop.f32.mrf.mxu0 }
 0x715   :  { %v1744_v60 = vmax.f32 %v1666_v58, 0.0  ;;  %v1681_v62 = vadd.f32 %v3182_v59, %v2352_v54 }
 0x716   :  { %v1675_v63 = vpop.f32.mrf.mxu0 }
 0x717   :  { %v1676_v0 = vadd.f32 %v2352_v54, %v1675_v63  ;;  %3233 = vmatprep.mubr.f32.mxu1 %v1744_v60  ;;  %v1747_v3 = vmax.f32 %v1681_v62, 0.0 }
 0x718   :  { %v3185_v1 = vpop.f32.mrf.mxu0  ;;  %3234 = vmatmul.mubr.f32.vlgmr.msra.gmra.mxu1 %v1745_v61 }
 0x719   :  { %v1746_v2 = vmax.f32 %v1676_v0, 0.0  ;;  %v1691_v4 = vadd.f32 %v3185_v1, %v2352_v54  ;;  %3385 = vmatpush3.msra.mxu1 %v2147_v42 }
 0x71a   :  { %v1685_v5 = vpop.f32.mrf.mxu0  ;;  %3370 = vmatprep.subr.mxu1 %v2146_v43 }
 0x71b   :  { %v1686_v6 = vadd.f32 %v2352_v54, %v1685_v5  ;;  %3236 = vmatprep.mubr.f32.mxu1 %v1746_v2  ;;  %v1749_v9 = vmax.f32 %v1691_v4, 0.0  ;;  %3386 = vmatpush3.msra.mxu1 %v2146_v43 }
 0x71c   :  { %v3188_v7 = vpop.f32.mrf.mxu0  ;;  %3237 = vmatmul.mubr.f32.gmra.mxu1 %v1747_v3  ;;  %3371 = vmatprep.subr.mxu1 %v2145_v44 }
 0x71d   :  { %v1748_v8 = vmax.f32 %v1686_v6, 0.0  ;;  %v1701_v10 = vadd.f32 %v3188_v7, %v2352_v54  ;;  %3387 = vmatpush3.msra.mxu1 %v2145_v44 }
 0x71e   :  { %v1695_v11 = vpop.f32.mrf.mxu0  ;;  %3372 = vmatprep.subr.mxu1 %v2144_v45 }
 0x71f   :  { %v1696_v12 = vadd.f32 %v2352_v54, %v1695_v11  ;;  %3239 = vmatprep.mubr.f32.mxu1 %v1748_v8  ;;  %v1751_v15 = vmax.f32 %v1701_v10, 0.0  ;;  %3388 = vmatpush3.msra.mxu1 %v2144_v45 }
 0x720   :  { %v3191_v13 = vpop.f32.mrf.mxu0  ;;  %3240 = vmatmul.mubr.f32.gmra.mxu1 %v1749_v9  ;;  %3373 = vmatprep.subr.mxu1 %v3581_v46 }
 0x721   :  { %v1750_v14 = vmax.f32 %v1696_v12, 0.0  ;;  %v1711_v16 = vadd.f32 %v3191_v13, %v2352_v54  ;;  %3389 = vmatpush3.msra.mxu1 %v3581_v46 }
 0x722   :  { %v1705_v17 = vpop.f32.mrf.mxu0  ;;  %3374 = vmatprep.subr.mxu1 %v3587_v47 }
 0x723   :  { %v1706_v18 = vadd.f32 %v2352_v54, %v1705_v17  ;;  %3242 = vmatprep.mubr.f32.mxu1 %v1750_v14  ;;  %v1753_v21 = vmax.f32 %v1711_v16, 0.0  ;;  %3390 = vmatpush3.msra.mxu1 %v3587_v47 }
 0x724   :  { %v3194_v19 = vpop.f32.mrf.mxu0  ;;  %3243 = vmatmul.mubr.f32.gmra.mxu1 %v1751_v15  ;;  %3375 = vmatprep.subr.mxu1 %v3594_v48 }
 0x725   :  { %v1752_v20 = vmax.f32 %v1706_v18, 0.0  ;;  %v1721_v22 = vadd.f32 %v3194_v19, %v2352_v54  ;;  %3391 = vmatpush3.msra.mxu1 %v3594_v48 }
 0x726   :  { %v1715_v23 = vpop.f32.mrf.mxu0  ;;  %3376 = vmatprep.subr.mxu1 %v3601_v49 }
 0x727   :  { %v1716_v24 = vadd.f32 %v2352_v54, %v1715_v23  ;;  %3245 = vmatprep.mubr.f32.mxu1 %v1752_v20  ;;  %v1755_v27 = vmax.f32 %v1721_v22, 0.0  ;;  %3392 = vmatpush3.msra.mxu1 %v3601_v49 }
 0x728   :  { %v3197_v25 = vpop.f32.mrf.mxu0  ;;  %3246 = vmatmul.mubr.f32.gmra.mxu1 %v1753_v21  ;;  %3377 = vmatprep.subr.mxu1 %v3608_v50 }
 0x729   :  { %v1754_v26 = vmax.f32 %v1716_v24, 0.0  ;;  %v1731_v28 = vadd.f32 %v3197_v25, %v2352_v54  ;;  %3393 = vmatpush3.msra.mxu1 %v3608_v50 }
 0x72a   :  { %v1725_v29 = vpop.f32.mrf.mxu0  ;;  %3378 = vmatprep.subr.mxu1 %v3615_v51 }
 0x72b   :  { %v1726_v30 = vadd.f32 %v2352_v54, %v1725_v29  ;;  %3248 = vmatprep.mubr.f32.mxu1 %v1754_v26  ;;  %v1757_v33 = vmax.f32 %v1731_v28, 0.0  ;;  %3394 = vmatpush3.msra.mxu1 %v3615_v51 }
 0x72c   :  { %v3200_v31 = vpop.f32.mrf.mxu0  ;;  %3249 = vmatmul.mubr.f32.gmra.mxu1 %v1755_v27  ;;  %3379 = vmatprep.subr.mxu1 %v3622_v52 }
 0x72d   :  { %v1756_v32 = vmax.f32 %v1726_v30, 0.0  ;;  %v1741_v34 = vadd.f32 %v3200_v31, %v2352_v54  ;;  %3395 = vmatpush3.msra.mxu1 %v3622_v52 }
 0x72e   :  { %v1735_v35 = vpop.f32.mrf.mxu0  ;;  %3380 = vmatprep.subr.mxu1 %v3629_v53 }
 0x72f   :  { %v1736_v36 = vadd.f32 %v2352_v54, %v1735_v35  ;;  %3251 = vmatprep.mubr.f32.mxu1 %v1756_v32  ;;  %v1759_v38 = vmax.f32 %v1741_v34, 0.0  ;;  %3396 = vmatpush3.msra.mxu1 %v3629_v53  ;;  %v3637_v54 = vld [vmem:[%s3741_s4 + $0x8] ss:$0 sm:$0xff] }
 0x730   :  { %3252 = vmatmul.mubr.f32.gmra.mxu1 %v1757_v33  ;;  %3381 = vmatprep.subr.mxu1 %v2135_v39 }
 0x731   :  { %v1758_v37 = vmax.f32 %v1736_v36, 0.0  ;;  %3397 = vmatpush3.msra.mxu1 %v2135_v39 }
 0x732   :  { %3382 = vmatprep.subr.mxu1 %v2134_v40 }
 0x733   :  { %3254 = vmatprep.mubr.f32.mxu1 %v1758_v37  ;;  %3398 = vmatpush3.msra.mxu1 %v2134_v40 }
 0x734   :  { %3255 = vmatmul.mubr.f32.gmra.mxu1 %v1759_v38  ;;  %3383 = vmatprep.subr.mxu1 %v2133_v41 }
 0x735   :  { %3399 = vmatpush3.msra.mxu1 %v2133_v41 }
 0x7d8   :  { %v3235_v55 = vpop.f32.mrf.mxu1 }
 0x7d9   :  { %v1857_v56 = vadd.f32 %v3235_v55, %v3637_v54 }
 0x7da   :  { %v1851_v57 = vpop.f32.mrf.mxu1 }
 0x7db   :  { %v1852_v58 = vadd.f32 %v3637_v54, %v1851_v57  ;;  %v1931_v61 = vmax.f32 %v1857_v56, 0.0 }
 0x7dc   :  { %v3238_v59 = vpop.f32.mrf.mxu1 }
 0x7dd   :  { %v1930_v60 = vmax.f32 %v1852_v58, 0.0  ;;  %v1867_v62 = vadd.f32 %v3238_v59, %v3637_v54 }
 0x7de   :  { %v1861_v63 = vpop.f32.mrf.mxu1 }
 0x7df   :  { %v1862_v0 = vadd.f32 %v3637_v54, %v1861_v63  ;;  %3289 = vmatprep.mubr.f32.mxu0 %v1930_v60  ;;  %v1933_v3 = vmax.f32 %v1867_v62, 0.0 }
 0x7e0   :  { %v3241_v1 = vpop.f32.mrf.mxu1  ;;  %3290 = vmatmul.mubr.f32.vlgmr.msra.gmra.mxu0 %v1931_v61 }
 0x7e1   :  { %v1932_v2 = vmax.f32 %v1862_v0, 0.0  ;;  %3314 = vmatpush3.msra.mxu0 %v2147_v42  ;;  %v1877_v4 = vadd.f32 %v3241_v1, %v3637_v54  ;;  %v2132_v42 = vld [vmem:[%s3742_s5] sm:$0xff] }
 0x7e2   :  { %v1871_v5 = vpop.f32.mrf.mxu1  ;;  %3315 = vmatprep.subr.mxu0 %v2146_v43  ;;  %3384 = vmatprep.subr.mxu1 %v2132_v42 }
 0x7e3   :  { %v1872_v6 = vadd.f32 %v3637_v54, %v1871_v5  ;;  %3292 = vmatprep.mubr.f32.mxu0 %v1932_v2  ;;  %3316 = vmatpush3.msra.mxu0 %v2146_v43  ;;  %v1935_v9 = vmax.f32 %v1877_v4, 0.0  ;;  %v2356_v43 = vld [vmem:[%s3741_s4 + $0x9] ss:$0 sm:$0xff] }
 0x7e4   :  { %v3244_v7 = vpop.f32.mrf.mxu1  ;;  %3293 = vmatmul.mubr.f32.gmra.mxu0 %v1933_v3  ;;  %3317 = vmatprep.subr.mxu0 %v2145_v44 }
 0x7e5   :  { %v1934_v8 = vmax.f32 %v1872_v6, 0.0  ;;  %3318 = vmatpush3.msra.mxu0 %v2145_v44  ;;  %v1887_v10 = vadd.f32 %v3244_v7, %v3637_v54  ;;  %3400 = vmatpush3.msra.mxu1 %v2132_v42 }
 0x7e6   :  { %v1881_v11 = vpop.f32.mrf.mxu1  ;;  %3319 = vmatprep.subr.mxu0 %v2144_v45 }
 0x7e7   :  { %v1882_v12 = vadd.f32 %v3637_v54, %v1881_v11  ;;  %3295 = vmatprep.mubr.f32.mxu0 %v1934_v8  ;;  %3320 = vmatpush3.msra.mxu0 %v2144_v45  ;;  %v1937_v15 = vmax.f32 %v1887_v10, 0.0 }
 0x7e8   :  { %v3247_v13 = vpop.f32.mrf.mxu1  ;;  %3296 = vmatmul.mubr.f32.gmra.mxu0 %v1935_v9  ;;  %3321 = vmatprep.subr.mxu0 %v3581_v46 }
 0x7e9   :  { %v1936_v14 = vmax.f32 %v1882_v12, 0.0  ;;  %3322 = vmatpush3.msra.mxu0 %v3581_v46  ;;  %v1897_v16 = vadd.f32 %v3247_v13, %v3637_v54 }
 0x7ea   :  { %v1891_v17 = vpop.f32.mrf.mxu1  ;;  %3323 = vmatprep.subr.mxu0 %v3587_v47 }
 0x7eb   :  { %v1892_v18 = vadd.f32 %v3637_v54, %v1891_v17  ;;  %3298 = vmatprep.mubr.f32.mxu0 %v1936_v14  ;;  %3324 = vmatpush3.msra.mxu0 %v3587_v47  ;;  %v1939_v21 = vmax.f32 %v1897_v16, 0.0 }
 0x7ec   :  { %v3250_v19 = vpop.f32.mrf.mxu1  ;;  %3299 = vmatmul.mubr.f32.gmra.mxu0 %v1937_v15  ;;  %3325 = vmatprep.subr.mxu0 %v3594_v48 }
 0x7ed   :  { %v1938_v20 = vmax.f32 %v1892_v18, 0.0  ;;  %3326 = vmatpush3.msra.mxu0 %v3594_v48  ;;  %v1907_v22 = vadd.f32 %v3250_v19, %v3637_v54 }
 0x7ee   :  { %v1901_v23 = vpop.f32.mrf.mxu1  ;;  %3327 = vmatprep.subr.mxu0 %v3601_v49 }
 0x7ef   :  { %v1902_v24 = vadd.f32 %v3637_v54, %v1901_v23  ;;  %3301 = vmatprep.mubr.f32.mxu0 %v1938_v20  ;;  %3328 = vmatpush3.msra.mxu0 %v3601_v49  ;;  %v1941_v27 = vmax.f32 %v1907_v22, 0.0 }
 0x7f0   :  { %v3253_v25 = vpop.f32.mrf.mxu1  ;;  %3302 = vmatmul.mubr.f32.gmra.mxu0 %v1939_v21  ;;  %3329 = vmatprep.subr.mxu0 %v3608_v50 }
 0x7f1   :  { %v1940_v26 = vmax.f32 %v1902_v24, 0.0  ;;  %3330 = vmatpush3.msra.mxu0 %v3608_v50  ;;  %v1917_v28 = vadd.f32 %v3253_v25, %v3637_v54 }
 0x7f2   :  { %v1911_v29 = vpop.f32.mrf.mxu1  ;;  %3331 = vmatprep.subr.mxu0 %v3615_v51 }
 0x7f3   :  { %v1912_v30 = vadd.f32 %v3637_v54, %v1911_v29  ;;  %3304 = vmatprep.mubr.f32.mxu0 %v1940_v26  ;;  %3332 = vmatpush3.msra.mxu0 %v3615_v51  ;;  %v1943_v33 = vmax.f32 %v1917_v28, 0.0  ;;  %v2357_v28 = vld [vmem:[%s3743_s6] ss:$0 sm:$0xff] }
 0x7f4   :  { %v3256_v31 = vpop.f32.mrf.mxu1  ;;  %3305 = vmatmul.mubr.f32.gmra.mxu0 %v1941_v27  ;;  %3333 = vmatprep.subr.mxu0 %v3622_v52 }
 0x7f5   :  { %v1942_v32 = vmax.f32 %v1912_v30, 0.0  ;;  %3334 = vmatpush3.msra.mxu0 %v3622_v52  ;;  %v1927_v34 = vadd.f32 %v3256_v31, %v3637_v54 }
 0x7f6   :  { %v1921_v35 = vpop.f32.mrf.mxu1  ;;  %3335 = vmatprep.subr.mxu0 %v3629_v53 }
 0x7f7   :  { %v1922_v36 = vadd.f32 %v3637_v54, %v1921_v35  ;;  %3307 = vmatprep.mubr.f32.mxu0 %v1942_v32  ;;  %3336 = vmatpush3.msra.mxu0 %v3629_v53  ;;  %v1945_v38 = vmax.f32 %v1927_v34, 0.0 }
 0x7f8   :  { %3308 = vmatmul.mubr.f32.gmra.mxu0 %v1943_v33  ;;  %3337 = vmatprep.subr.mxu0 %v2135_v39 }
 0x7f9   :  { %v1944_v37 = vmax.f32 %v1922_v36, 0.0  ;;  %3338 = vmatpush3.msra.mxu0 %v2135_v39 }
 0x7fa   :  { %3339 = vmatprep.subr.mxu0 %v2134_v40 }
 0x7fb   :  { %3310 = vmatprep.mubr.f32.mxu0 %v1944_v37  ;;  %3340 = vmatpush3.msra.mxu0 %v2134_v40 }
 0x7fc   :  { %3311 = vmatmul.mubr.f32.gmra.mxu0 %v1945_v38  ;;  %3341 = vmatprep.subr.mxu0 %v2133_v41 }
 0x7fd   :  { %3342 = vmatpush3.msra.mxu0 %v2133_v41 }
 0x7fe   :  { %3343 = vmatprep.subr.mxu0 %v2132_v42 }
 0x7ff   :  { %3344 = vmatpush3.msra.mxu0 %v2132_v42 }
 0x8a0   :  { %v3291_v44 = vpop.f32.mrf.mxu0 }
 0x8a1   :  { %v2043_v45 = vadd.f32 %v3291_v44, %v2356_v43 }
 0x8a2   :  { %v2037_v46 = vpop.f32.mrf.mxu0 }
 0x8a3   :  { %v2038_v47 = vadd.f32 %v2356_v43, %v2037_v46  ;;  %v2117_v50 = vmax.f32 %v2043_v45, 0.0 }
 0x8a4   :  { %v3294_v48 = vpop.f32.mrf.mxu0 }
 0x8a5   :  { %v2116_v49 = vmax.f32 %v2038_v47, 0.0  ;;  %v2053_v51 = vadd.f32 %v3294_v48, %v2356_v43 }
 0x8a6   :  { %v2047_v52 = vpop.f32.mrf.mxu0 }
 0x8a7   :  { %v2048_v53 = vadd.f32 %v2356_v43, %v2047_v52  ;;  %3345 = vmatprep.mubr.f32.mxu0 %v2116_v49  ;;  %v2119_v56 = vmax.f32 %v2053_v51, 0.0 }
 0x8a8   :  { %v3297_v54 = vpop.f32.mrf.mxu0  ;;  %3346 = vmatmul.mubr.f32.vlgmr.msra.gmra.mxu0 %v2117_v50 }
 0x8a9   :  { %v2118_v55 = vmax.f32 %v2048_v53, 0.0  ;;  %v2063_v57 = vadd.f32 %v3297_v54, %v2356_v43 }
 0x8aa   :  { %v2057_v58 = vpop.f32.mrf.mxu0 }
 0x8ab   :  { %v2058_v59 = vadd.f32 %v2356_v43, %v2057_v58  ;;  %3348 = vmatprep.mubr.f32.mxu0 %v2118_v55  ;;  %v2121_v62 = vmax.f32 %v2063_v57, 0.0 }
 0x8ac   :  { %v3300_v60 = vpop.f32.mrf.mxu0  ;;  %3349 = vmatmul.mubr.f32.gmra.mxu0 %v2119_v56 }
 0x8ad   :  { %v2120_v61 = vmax.f32 %v2058_v59, 0.0  ;;  %v2073_v63 = vadd.f32 %v3300_v60, %v2356_v43 }
 0x8ae   :  { %v2067_v0 = vpop.f32.mrf.mxu0 }
 0x8af   :  { %v2068_v1 = vadd.f32 %v2356_v43, %v2067_v0  ;;  %3351 = vmatprep.mubr.f32.mxu0 %v2120_v61  ;;  %v2123_v4 = vmax.f32 %v2073_v63, 0.0 }
 0x8b0   :  { %v3303_v2 = vpop.f32.mrf.mxu0  ;;  %3352 = vmatmul.mubr.f32.gmra.mxu0 %v2121_v62 }
 0x8b1   :  { %v2122_v3 = vmax.f32 %v2068_v1, 0.0  ;;  %v2083_v5 = vadd.f32 %v3303_v2, %v2356_v43 }
 0x8b2   :  { %v2077_v6 = vpop.f32.mrf.mxu0 }
 0x8b3   :  { %v2078_v7 = vadd.f32 %v2356_v43, %v2077_v6  ;;  %3354 = vmatprep.mubr.f32.mxu1 %v2122_v3  ;;  %v2125_v10 = vmax.f32 %v2083_v5, 0.0 }
 0x8b4   :  { %v3306_v8 = vpop.f32.mrf.mxu0  ;;  %3355 = vmatmul.mubr.f32.vlgmr.msra.gmra.mxu1 %v2123_v4 }
 0x8b5   :  { %v2124_v9 = vmax.f32 %v2078_v7, 0.0  ;;  %v2093_v11 = vadd.f32 %v3306_v8, %v2356_v43 }
 0x8b6   :  { %v2087_v12 = vpop.f32.mrf.mxu0 }
 0x8b7   :  { %v2088_v13 = vadd.f32 %v2356_v43, %v2087_v12  ;;  %3357 = vmatprep.mubr.f32.mxu1 %v2124_v9  ;;  %v2127_v16 = vmax.f32 %v2093_v11, 0.0 }
 0x8b8   :  { %v3309_v14 = vpop.f32.mrf.mxu0  ;;  %3358 = vmatmul.mubr.f32.gmra.mxu1 %v2125_v10 }
 0x8b9   :  { %v2126_v15 = vmax.f32 %v2088_v13, 0.0  ;;  %v2103_v17 = vadd.f32 %v3309_v14, %v2356_v43 }
 0x8ba   :  { %v2097_v18 = vpop.f32.mrf.mxu0 }
 0x8bb   :  { %v2098_v19 = vadd.f32 %v2356_v43, %v2097_v18  ;;  %3360 = vmatprep.mubr.f32.mxu1 %v2126_v15  ;;  %v2129_v22 = vmax.f32 %v2103_v17, 0.0 }
 0x8bc   :  { %v3312_v20 = vpop.f32.mrf.mxu0  ;;  %3361 = vmatmul.mubr.f32.gmra.mxu1 %v2127_v16 }
 0x8bd   :  { %v2128_v21 = vmax.f32 %v2098_v19, 0.0  ;;  %v2113_v23 = vadd.f32 %v3312_v20, %v2356_v43 }
 0x8be   :  { %v2107_v24 = vpop.f32.mrf.mxu0 }
 0x8bf   :  { %v2108_v25 = vadd.f32 %v2356_v43, %v2107_v24  ;;  %3363 = vmatprep.mubr.f32.mxu1 %v2128_v21  ;;  %v2131_v27 = vmax.f32 %v2113_v23, 0.0 }
 0x8c0   :  { %3364 = vmatmul.mubr.f32.gmra.mxu1 %v2129_v22 }
 0x8c1   :  { %v2130_v26 = vmax.f32 %v2108_v25, 0.0 }
 0x8c3   :  { %3366 = vmatprep.mubr.f32.mxu1 %v2130_v26 }
 0x8c4   :  { %3367 = vmatmul.mubr.f32.gmra.mxu1 %v2131_v27 }
 0x968   :  { %v3347_v29 = vpop.f32.mrf.mxu0 }
 0x969   :  { %v2227_v30 = vadd.f32 %v3347_v29, %v2357_v28 }
 0x96a   :  { %v2221_v31 = vpop.f32.mrf.mxu0 }
 0x96b   :  { %2301 = vst [vmem:[%s3744_s7 + $0x8] sm:$0xff] %v2227_v30  ;;  %v2222_v32 = vadd.f32 %v2357_v28, %v2221_v31 }
 0x96c   :  { %v3350_v33 = vpop.f32.mrf.mxu0 }
 0x96d   :  { %2300 = vst [vmem:[%s3744_s7] sm:$0xff] %v2222_v32  ;;  %v2237_v34 = vadd.f32 %v3350_v33, %v2357_v28 }
 0x96e   :  { %v2231_v35 = vpop.f32.mrf.mxu0 }
 0x96f   :  { %2303 = vst [vmem:[%s3744_s7 + $0x18] sm:$0xff] %v2237_v34  ;;  %v2232_v36 = vadd.f32 %v2357_v28, %v2231_v35 }
 0x970   :  { %v3353_v37 = vpop.f32.mrf.mxu0 }
 0x971   :  { %2302 = vst [vmem:[%s3744_s7 + $0x10] sm:$0xff] %v2232_v36  ;;  %v2247_v38 = vadd.f32 %v3353_v37, %v2357_v28 }
 0x972   :  { %v2241_v39 = vpop.f32.mrf.mxu0 }
 0x973   :  { %2305 = vst [vmem:[%s3744_s7 + $0x28] sm:$0xff] %v2247_v38  ;;  %v2242_v40 = vadd.f32 %v2357_v28, %v2241_v39 }
 0x974   :  { %v3356_v41 = vpop.f32.mrf.mxu1 }
 0x975   :  { %2304 = vst [vmem:[%s3744_s7 + $0x20] sm:$0xff] %v2242_v40  ;;  %v2257_v42 = vadd.f32 %v3356_v41, %v2357_v28 }
 0x976   :  { %v2251_v43 = vpop.f32.mrf.mxu1 }
 0x977   :  { %2307 = vst [vmem:[%s3744_s7 + $0x38] sm:$0xff] %v2257_v42  ;;  %v2252_v44 = vadd.f32 %v2357_v28, %v2251_v43 }
 0x978   :  { %v3359_v45 = vpop.f32.mrf.mxu1 }
 0x979   :  { %2306 = vst [vmem:[%s3744_s7 + $0x30] sm:$0xff] %v2252_v44  ;;  %v2267_v46 = vadd.f32 %v3359_v45, %v2357_v28 }
 0x97a   :  { %v2261_v47 = vpop.f32.mrf.mxu1 }
 0x97b   :  { %2309 = vst [vmem:[%s3744_s7 + $0x48] sm:$0xff] %v2267_v46  ;;  %v2262_v48 = vadd.f32 %v2357_v28, %v2261_v47 }
 0x97c   :  { %v3362_v49 = vpop.f32.mrf.mxu1 }
 0x97d   :  { %2308 = vst [vmem:[%s3744_s7 + $0x40] sm:$0xff] %v2262_v48  ;;  %v2277_v50 = vadd.f32 %v3362_v49, %v2357_v28 }
 0x97e   :  { %v2271_v51 = vpop.f32.mrf.mxu1 }
 0x97f   :  { %2311 = vst [vmem:[%s3744_s7 + $0x58] sm:$0xff] %v2277_v50  ;;  %v2272_v52 = vadd.f32 %v2357_v28, %v2271_v51 }
 0x980   :  { %v3365_v53 = vpop.f32.mrf.mxu1 }
 0x981   :  { %2310 = vst [vmem:[%s3744_s7 + $0x50] sm:$0xff] %v2272_v52  ;;  %v2287_v54 = vadd.f32 %v3365_v53, %v2357_v28 }
 0x982   :  { %v2281_v55 = vpop.f32.mrf.mxu1 }
 0x983   :  { %2313 = vst [vmem:[%s3744_s7 + $0x68] sm:$0xff] %v2287_v54  ;;  %v2282_v56 = vadd.f32 %v2357_v28, %v2281_v55 }
 0x984   :  { %v3368_v57 = vpop.f32.mrf.mxu1 }
 0x985   :  { %2312 = vst [vmem:[%s3744_s7 + $0x60] sm:$0xff] %v2282_v56  ;;  %v2297_v58 = vadd.f32 %v3368_v57, %v2357_v28 }
 0x986   :  { %v2291_v59 = vpop.f32.mrf.mxu1 }
 0x987   :  { %2315 = vst [vmem:[%s3744_s7 + $0x78] sm:$0xff] %v2297_v58  ;;  %v2292_v60 = vadd.f32 %v2357_v28, %v2291_v59 }
 0x989   :  { %2314 = vst [vmem:[%s3744_s7 + $0x70] sm:$0xff] %v2292_v60 }
 0x98a   :  { %2320 = vsyncpa [#allocation3], 1 }

</bundles_post_ra>
